<compile_context>
chip_gen: v5e
topology: v5e:2x2
jax: 0.10.0
libtpu: 0.0.40
codegen_flags: <defaults>
</compile_context>

<pallas_src>
import functools

import jax
import jax.numpy as jnp
from jax.experimental import pallas as pl
from jax.experimental.pallas import tpu as pltpu


def _round_up(v, m):
    return ((v + m - 1) // m) * m


# ---------------------------------------------------------------------------
# Fused forward kernel
# ---------------------------------------------------------------------------

def _fused_forward_kernel(
    data_ref, idx_ref, w_ref, p_ref, out_ref, *,
    num_layers, atom_fea_dim, edge_dim, node_dim, h_dim,
    num_nodes, num_edges, num_graphs, x_rows, eps,
    emb_off, zi_off, zj_off, ze_off, fc_off,
):
    f32 = jnp.float32
    bf16 = jnp.bfloat16
    D = node_dim

    # ---- packed inputs (static slices of the 4 slabs) ----------------------
    x_bf = data_ref[0:num_nodes, 0:atom_fea_dim]                  # [N, F] bf16
    ea_bf = data_ref[x_rows:x_rows + num_edges, 0:edge_dim]       # [E, Fe] bf16

    w_emb = w_ref[emb_off:emb_off + atom_fea_dim, 0:D]            # [F, D]
    w_zi = w_ref[zi_off:zi_off + D, 0:2 * D]                      # [D, 2D]
    w_zj = w_ref[zj_off:zj_off + D, 0:2 * D]                      # [D, 2D]
    w_ze = w_ref[ze_off:ze_off + edge_dim, 0:2 * D]               # [Fe, 2D]
    w_fc = w_ref[fc_off:fc_off + D, 0:h_dim]                      # [D, H]

    b_emb = p_ref[0:1, 0:D]
    b_z = p_ref[1:2, 0:2 * D]
    gamma = p_ref[2:3, 0:D]
    beta = p_ref[3:4, 0:D]
    b_fc = p_ref[4:5, 0:h_dim]
    w_out_row = p_ref[5:6, 0:h_dim]
    b_out = p_ref[6:7, 0:1]

    src_row = idx_ref[0:1, 0:num_edges]                           # [1, E]
    tgt_row = idx_ref[1:2, 0:num_edges]                           # [1, E]
    batch_row = idx_ref[2:3, 0:num_nodes]                         # [1, N]

    # ---- embedding: h = x @ w_emb + b_emb                       [N, D] f32
    h = jnp.dot(x_bf, w_emb, preferred_element_type=f32) + b_emb

    # ---- one [N, E] one-hot mask per edge index, built once, reused for
    #      gather (contract N) and scatter-add (contract E). bf16 is exact.
    iota_ne = jax.lax.broadcasted_iota(jnp.int32, (num_nodes, num_edges), 0)
    oh_tgt = (iota_ne == tgt_row).astype(bf16)                    # [N, E]
    oh_src = (iota_ne == src_row).astype(bf16)                    # [N, E]

    # Loop-invariant edge-attr contribution + fused bias [bf || bs].
    ea_term = jnp.dot(ea_bf, w_ze, preferred_element_type=f32) + b_z   # [E, 2D]

    gather_dims = (((0,), (0,)), ((), ()))   # contract node axis of both

    # ---- CGConv stack (layers share deep-copied initial params) ------------
    for _ in range(num_layers):
        h_bf = h.astype(bf16)
        # Node-level fused gate/core projections first (N rows, not E rows).
        pi = jnp.dot(h_bf, w_zi, preferred_element_type=f32)      # [N, 2D]
        pj = jnp.dot(h_bf, w_zj, preferred_element_type=f32)      # [N, 2D]
        # Per-edge gather via transposed contraction of the one-hot mask.
        fs = (jax.lax.dot_general(oh_tgt, pi.astype(bf16), gather_dims,
                                  preferred_element_type=f32)
              + jax.lax.dot_general(oh_src, pj.astype(bf16), gather_dims,
                                    preferred_element_type=f32)
              + ea_term)                                          # [E, 2D] f32
        gate = jax.nn.sigmoid(fs[:, 0:D])                         # lanes 0:D
        # Bring lanes D:2D down to 0:D via XLU roll (avoids offset lane slice).
        core = jax.nn.softplus(pltpu.roll(fs, shift=D, axis=1)[:, 0:D])
        msg = gate * core                                         # [E, D] f32

        # Scatter-add of messages to target nodes (same mask, plain dot).
        agg = jnp.dot(oh_tgt, msg.astype(bf16),
                      preferred_element_type=f32)                 # [N, D]

        # BatchNorm1d (training-mode biased stats, single pass) + residual.
        mean = jnp.mean(agg, axis=0, keepdims=True)
        var = jnp.maximum(
            jnp.mean(agg * agg, axis=0, keepdims=True) - mean * mean, 0.0)
        h = (agg - mean) * jax.lax.rsqrt(var + eps) * gamma + beta + h

    # ---- scatter(..., reduce='mean') over graphs ----------------------------
    iota_gn = jax.lax.broadcasted_iota(jnp.int32, (num_graphs, num_nodes), 0)
    pool = (iota_gn == batch_row).astype(f32)                     # [G, N]
    counts = jnp.maximum(jnp.sum(pool, axis=1, keepdims=True), 1.0)
    g = jnp.dot(pool.astype(bf16), h.astype(bf16),
                preferred_element_type=f32) / counts              # [G, D]

    # ---- regression head: softplus -> fc -> softplus -> fc_out -------------
    g = jax.nn.softplus(g)
    g = jnp.dot(g.astype(bf16), w_fc, preferred_element_type=f32) + b_fc
    g = jax.nn.softplus(g)
    out_ref[...] = jnp.sum(g * w_out_row, axis=-1, keepdims=True) + b_out


# ---------------------------------------------------------------------------
# Parameters
# ---------------------------------------------------------------------------

def init_params(key, atom_fea_dim, edge_dim, node_dim, h_dim):
    """Deterministic synthetic parameters. Linear weights stored as [in, out]."""
    def linear(k, fan_in, fan_out):
        kw, kb = jax.random.split(k)
        bound = 1.0 / jnp.sqrt(fan_in)
        w = jax.random.uniform(kw, (fan_in, fan_out), jnp.float32, -bound, bound)
        b = jax.random.uniform(kb, (1, fan_out), jnp.float32, -bound, bound)
        return w, b

    keys = jax.random.split(key, 6)
    params = {}
    params["embedding"] = linear(keys[0], atom_fea_dim, node_dim)

    # One CGConv layer, deep-copied num_layers times in the PyTorch module, so
    # all layers share identical initial parameters.
    z_dim = 2 * node_dim + edge_dim
    wf, bf = linear(keys[1], z_dim, node_dim)
    ws, bs = linear(keys[2], z_dim, node_dim)
    gamma = jnp.ones((1, node_dim), jnp.float32)
    beta = jnp.zeros((1, node_dim), jnp.float32)
    params["cgconv"] = dict(wf=wf, bf=bf, ws=ws, bs=bs, gamma=gamma, beta=beta)

    params["fc"] = linear(keys[3], node_dim, h_dim)
    params["fc_out"] = linear(keys[4], h_dim, 1)
    return params


# ---------------------------------------------------------------------------
# Forward (single fused pallas_call, 4 packed input slabs)
# ---------------------------------------------------------------------------

def my_model_forward(params, x, edge_index, edge_attr, batch, num_graphs,
                     num_layers=3):
    n, atom_fea_dim = x.shape
    e, edge_dim = edge_attr.shape
    node_dim = params["cgconv"]["gamma"].shape[1]
    h_dim = params["fc"][0].shape[1]
    width = _round_up(max(2 * node_dim, h_dim), 128)   # lane-dense slabs

    src = edge_index[0].astype(jnp.int32)
    tgt = edge_index[1].astype(jnp.int32)
    batch = batch.astype(jnp.int32)

    # ---- bf16 data slab: [x ; edge_attr], 16-row-aligned sections ----------
    x_rows = _round_up(n, 16)
    e_rows = _round_up(e, 16)
    data16 = jnp.zeros((x_rows + e_rows, width), jnp.bfloat16)
    data16 = data16.at[:n, :atom_fea_dim].set(x.astype(jnp.bfloat16))
    data16 = data16.at[x_rows:x_rows + e, :edge_dim].set(
        edge_attr.astype(jnp.bfloat16))

    # ---- int32 index slab: src / tgt / batch as rows ------------------------
    idx_width = _round_up(max(n, e), 128)
    idx32 = jnp.full((8, idx_width), -1, jnp.int32)
    idx32 = idx32.at[0, :e].set(src)
    idx32 = idx32.at[1, :e].set(tgt)
    idx32 = idx32.at[2, :n].set(batch)

    # ---- bf16 weight slab (MXU operands), pre-split along K so no in-kernel
    #      concat of [x_i, x_j, edge_attr] is needed ---------------------------
    c = params["cgconv"]
    wcat = jnp.concatenate([c["wf"], c["ws"]], axis=1)   # [z_dim, 2*node_dim]
    w_zi = wcat[:node_dim]                               # multiplies x_i
    w_zj = wcat[node_dim:2 * node_dim]                   # multiplies x_j
    w_ze = wcat[2 * node_dim:]                           # multiplies edge_attr
    w_emb, b_emb = params["embedding"]
    w_fc, b_fc = params["fc"]
    w_out, b_out = params["fc_out"]

    emb_off = 0
    zi_off = emb_off + _round_up(atom_fea_dim, 16)
    zj_off = zi_off + _round_up(node_dim, 16)
    ze_off = zj_off + _round_up(node_dim, 16)
    fc_off = ze_off + _round_up(edge_dim, 16)
    w_rows = fc_off + _round_up(node_dim, 16)

    w16 = jnp.zeros((w_rows, width), jnp.bfloat16)
    w16 = w16.at[emb_off:emb_off + atom_fea_dim, :node_dim].set(
        w_emb.astype(jnp.bfloat16))
    w16 = w16.at[zi_off:zi_off + node_dim, :2 * node_dim].set(
        w_zi.astype(jnp.bfloat16))
    w16 = w16.at[zj_off:zj_off + node_dim, :2 * node_dim].set(
        w_zj.astype(jnp.bfloat16))
    w16 = w16.at[ze_off:ze_off + edge_dim, :2 * node_dim].set(
        w_ze.astype(jnp.bfloat16))
    w16 = w16.at[fc_off:fc_off + node_dim, :h_dim].set(
        w_fc.astype(jnp.bfloat16))

    # ---- f32 param slab: biases, BN affine, fc_out as a row ----------------
    bcat = jnp.concatenate([c["bf"], c["bs"]], axis=1)   # [1, 2*node_dim]
    p32 = jnp.zeros((8, width), jnp.float32)
    p32 = p32.at[0, :node_dim].set(b_emb[0])
    p32 = p32.at[1, :2 * node_dim].set(bcat[0])
    p32 = p32.at[2, :node_dim].set(c["gamma"][0])
    p32 = p32.at[3, :node_dim].set(c["beta"][0])
    p32 = p32.at[4, :h_dim].set(b_fc[0])
    p32 = p32.at[5, :h_dim].set(w_out[:, 0])
    p32 = p32.at[6, 0].set(b_out[0, 0])

    kernel = functools.partial(
        _fused_forward_kernel,
        num_layers=num_layers, atom_fea_dim=atom_fea_dim, edge_dim=edge_dim,
        node_dim=node_dim, h_dim=h_dim, num_nodes=n, num_edges=e,
        num_graphs=num_graphs, x_rows=x_rows, eps=1e-5,
        emb_off=emb_off, zi_off=zi_off, zj_off=zj_off, ze_off=ze_off,
        fc_off=fc_off,
    )

    args = (data16, idx32, w16, p32)
    in_specs = [pl.BlockSpec(a.shape, lambda i: (0, 0)) for a in args]

    return pl.pallas_call(
        kernel,
        out_shape=jax.ShapeDtypeStruct((num_graphs, 1), jnp.float32),
        grid=(1,),
        in_specs=in_specs,
        out_specs=pl.BlockSpec((num_graphs, 1), lambda i: (0, 0)),
        compiler_params=pltpu.CompilerParams(
            dimension_semantics=("arbitrary",)),
    )(*args)


# ---------------------------------------------------------------------------
# Main
# ---------------------------------------------------------------------------

if __name__ == "__main__":
    atom_fea_dim = 16
    edge_dim = 8
    node_dim = 64
    h_dim = 128
    num_layers = 3

    num_nodes = 12
    num_edges = 32
    num_graphs = 2

    key = jax.random.PRNGKey(0)
    k_param, k_x, k_e, k_src, k_tgt = jax.random.split(key, 5)

    params = init_params(k_param, atom_fea_dim, edge_dim, node_dim, h_dim)

    x = jax.random.normal(k_x, (num_nodes, atom_fea_dim), jnp.float32)
    edge_attr = jax.random.normal(k_e, (num_edges, edge_dim), jnp.float32)
    src = jax.random.randint(k_src, (num_edges,), 0, num_nodes, jnp.int32)
    tgt = jax.random.randint(k_tgt, (num_edges,), 0, num_nodes, jnp.int32)
    edge_index = jnp.stack([src, tgt], axis=0)  # [2, E]
    batch = jnp.concatenate(
        [jnp.zeros((6,), jnp.int32), jnp.ones((6,), jnp.int32)]
    )  # node -> graph id

    # TODO(synk): classification branch (dropout + log_softmax) of the PyTorch
    # module is not exercised here (classification=False regression head).
    fwd = jax.jit(functools.partial(
        my_model_forward, num_graphs=num_graphs, num_layers=num_layers))
    out = fwd(params, x, edge_index, edge_attr, batch)
    jax.block_until_ready(out)
    assert out.shape == (num_graphs, 1)
    print("KERNEL_OK")
</pallas_src>

<mosaic_0001>
module attributes {stable_mosaic.version = 11 : i64} {
  func.func @_fused_forward_kernel(%arg0: i32, %arg1: memref<48x128xbf16, #tpu.memory_space<vmem>>, %arg2: memref<8x128xi32, #tpu.memory_space<vmem>>, %arg3: memref<224x128xbf16, #tpu.memory_space<vmem>>, %arg4: memref<8x128xf32, #tpu.memory_space<vmem>>, %arg5: memref<2x1xf32, #tpu.memory_space<vmem>>) attributes {dimension_semantics = [#tpu.dimension_semantics<arbitrary>], iteration_bounds = array<i64: 1>, scalar_prefetch = 0 : i64, scratch_operands = 0 : i64, tpu.core_type = #tpu.core_type<tc>, window_params = [{pipeline_mode = #tpu.pipeline_mode<synchronous>, transform_indices = @transform_0, window_bounds = array<i64: 48, 128>}, {pipeline_mode = #tpu.pipeline_mode<synchronous>, transform_indices = @transform_1, window_bounds = array<i64: 8, 128>}, {pipeline_mode = #tpu.pipeline_mode<synchronous>, transform_indices = @transform_2, window_bounds = array<i64: 224, 128>}, {pipeline_mode = #tpu.pipeline_mode<synchronous>, transform_indices = @transform_3, window_bounds = array<i64: 8, 128>}, {pipeline_mode = #tpu.pipeline_mode<synchronous>, transform_indices = @transform_4, window_bounds = array<i64: 2, 1>}]} {
    %c0 = arith.constant 0 : index
    %c0_0 = arith.constant 0 : index
    %0 = vector.load %arg1[%c0, %c0_0] : memref<48x128xbf16, #tpu.memory_space<vmem>>, vector<12x16xbf16>
    %c16 = arith.constant 16 : index
    %c0_1 = arith.constant 0 : index
    %1 = vector.load %arg1[%c16, %c0_1] : memref<48x128xbf16, #tpu.memory_space<vmem>>, vector<32x8xbf16>
    %c0_2 = arith.constant 0 : index
    %c0_3 = arith.constant 0 : index
    %2 = vector.load %arg3[%c0_2, %c0_3] : memref<224x128xbf16, #tpu.memory_space<vmem>>, vector<16x64xbf16>
    %c16_4 = arith.constant 16 : index
    %c0_5 = arith.constant 0 : index
    %3 = vector.load %arg3[%c16_4, %c0_5] : memref<224x128xbf16, #tpu.memory_space<vmem>>, vector<64x128xbf16>
    %c80 = arith.constant 80 : index
    %c0_6 = arith.constant 0 : index
    %4 = vector.load %arg3[%c80, %c0_6] : memref<224x128xbf16, #tpu.memory_space<vmem>>, vector<64x128xbf16>
    %c144 = arith.constant 144 : index
    %c0_7 = arith.constant 0 : index
    %5 = vector.load %arg3[%c144, %c0_7] : memref<224x128xbf16, #tpu.memory_space<vmem>>, vector<8x128xbf16>
    %c160 = arith.constant 160 : index
    %c0_8 = arith.constant 0 : index
    %6 = vector.load %arg3[%c160, %c0_8] : memref<224x128xbf16, #tpu.memory_space<vmem>>, vector<64x128xbf16>
    %c0_9 = arith.constant 0 : index
    %c0_10 = arith.constant 0 : index
    %7 = vector.load %arg4[%c0_9, %c0_10] : memref<8x128xf32, #tpu.memory_space<vmem>>, vector<1x64xf32>
    %c1 = arith.constant 1 : index
    %c0_11 = arith.constant 0 : index
    %8 = vector.load %arg4[%c1, %c0_11] : memref<8x128xf32, #tpu.memory_space<vmem>>, vector<1x128xf32>
    %c2 = arith.constant 2 : index
    %c0_12 = arith.constant 0 : index
    %9 = vector.load %arg4[%c2, %c0_12] : memref<8x128xf32, #tpu.memory_space<vmem>>, vector<1x64xf32>
    %c3 = arith.constant 3 : index
    %c0_13 = arith.constant 0 : index
    %10 = vector.load %arg4[%c3, %c0_13] : memref<8x128xf32, #tpu.memory_space<vmem>>, vector<1x64xf32>
    %c4 = arith.constant 4 : index
    %c0_14 = arith.constant 0 : index
    %11 = vector.load %arg4[%c4, %c0_14] : memref<8x128xf32, #tpu.memory_space<vmem>>, vector<1x128xf32>
    %c5 = arith.constant 5 : index
    %c0_15 = arith.constant 0 : index
    %12 = vector.load %arg4[%c5, %c0_15] : memref<8x128xf32, #tpu.memory_space<vmem>>, vector<1x128xf32>
    %c6 = arith.constant 6 : index
    %c0_16 = arith.constant 0 : index
    %13 = vector.load %arg4[%c6, %c0_16] : memref<8x128xf32, #tpu.memory_space<vmem>>, vector<1x1xf32>
    %c0_17 = arith.constant 0 : index
    %c0_18 = arith.constant 0 : index
    %14 = vector.load %arg2[%c0_17, %c0_18] : memref<8x128xi32, #tpu.memory_space<vmem>>, vector<1x32xi32>
    %c1_19 = arith.constant 1 : index
    %c0_20 = arith.constant 0 : index
    %15 = vector.load %arg2[%c1_19, %c0_20] : memref<8x128xi32, #tpu.memory_space<vmem>>, vector<1x32xi32>
    %c2_21 = arith.constant 2 : index
    %c0_22 = arith.constant 0 : index
    %16 = vector.load %arg2[%c2_21, %c0_22] : memref<8x128xi32, #tpu.memory_space<vmem>>, vector<1x12xi32>
    %cst = arith.constant dense<0.000000e+00> : vector<12x64xf32>
    %17 = tpu.matmul %0, %2, %cst {dimension_numbers = #tpu.dot_dimension_numbers<[1], [0], [0], [1], [0, 0, 1, 1], [], []>} : vector<12x16xbf16>, vector<16x64xbf16>, vector<12x64xf32> -> vector<12x64xf32>
    %18 = vector.broadcast %7 : vector<1x64xf32> to vector<12x64xf32>
    %19 = arith.addf %17, %18 : vector<12x64xf32>
    %20 = tpu.iota {dimensions = array<i32: 0>} : vector<12x32xi32>
    %21 = vector.broadcast %15 : vector<1x32xi32> to vector<12x32xi32>
    %22 = arith.cmpi eq, %20, %21 : vector<12x32xi32>
    %23 = arith.extui %22 : vector<12x32xi1> to vector<12x32xi32>
    %24 = arith.sitofp %23 : vector<12x32xi32> to vector<12x32xf32>
    %25 = arith.truncf %24 : vector<12x32xf32> to vector<12x32xbf16>
    %26 = vector.broadcast %14 : vector<1x32xi32> to vector<12x32xi32>
    %27 = arith.cmpi eq, %20, %26 : vector<12x32xi32>
    %28 = arith.extui %27 : vector<12x32xi1> to vector<12x32xi32>
    %29 = arith.sitofp %28 : vector<12x32xi32> to vector<12x32xf32>
    %30 = arith.truncf %29 : vector<12x32xf32> to vector<12x32xbf16>
    %cst_23 = arith.constant dense<0.000000e+00> : vector<32x128xf32>
    %31 = tpu.matmul %1, %5, %cst_23 {dimension_numbers = #tpu.dot_dimension_numbers<[1], [0], [0], [1], [0, 0, 1, 1], [], []>} : vector<32x8xbf16>, vector<8x128xbf16>, vector<32x128xf32> -> vector<32x128xf32>
    %32 = vector.broadcast %8 : vector<1x128xf32> to vector<32x128xf32>
    %33 = arith.addf %31, %32 : vector<32x128xf32>
    %34 = arith.truncf %19 : vector<12x64xf32> to vector<12x64xbf16>
    %cst_24 = arith.constant dense<0.000000e+00> : vector<12x128xf32>
    %35 = tpu.matmul %34, %3, %cst_24 {dimension_numbers = #tpu.dot_dimension_numbers<[1], [0], [0], [1], [0, 0, 1, 1], [], []>} : vector<12x64xbf16>, vector<64x128xbf16>, vector<12x128xf32> -> vector<12x128xf32>
    %cst_25 = arith.constant dense<0.000000e+00> : vector<12x128xf32>
    %36 = tpu.matmul %34, %4, %cst_25 {dimension_numbers = #tpu.dot_dimension_numbers<[1], [0], [0], [1], [0, 0, 1, 1], [], []>} : vector<12x64xbf16>, vector<64x128xbf16>, vector<12x128xf32> -> vector<12x128xf32>
    %37 = arith.truncf %35 : vector<12x128xf32> to vector<12x128xbf16>
    %cst_26 = arith.constant dense<0.000000e+00> : vector<32x128xf32>
    %38 = tpu.matmul %25, %37, %cst_26 {dimension_numbers = #tpu.dot_dimension_numbers<[0], [0], [1], [1], [0, 1, 1, 1], [], []>} : vector<12x32xbf16>, vector<12x128xbf16>, vector<32x128xf32> -> vector<32x128xf32>
    %39 = arith.truncf %36 : vector<12x128xf32> to vector<12x128xbf16>
    %cst_27 = arith.constant dense<0.000000e+00> : vector<32x128xf32>
    %40 = tpu.matmul %30, %39, %cst_27 {dimension_numbers = #tpu.dot_dimension_numbers<[0], [0], [1], [1], [0, 1, 1, 1], [], []>} : vector<12x32xbf16>, vector<12x128xbf16>, vector<32x128xf32> -> vector<32x128xf32>
    %41 = arith.addf %38, %40 : vector<32x128xf32>
    %42 = arith.addf %41, %33 : vector<32x128xf32>
    %43 = vector.extract_strided_slice %42 {offsets = [0, 0], sizes = [32, 64], strides = [1, 1]} : vector<32x128xf32> to vector<32x64xf32>
    %44 = arith.negf %43 : vector<32x64xf32>
    %45 = math.exp %44 : vector<32x64xf32>
    %cst_28 = arith.constant 1.000000e+00 : f32
    %46 = vector.broadcast %cst_28 : f32 to vector<32x64xf32>
    %47 = arith.addf %46, %45 : vector<32x64xf32>
    %48 = arith.divf %46, %47 : vector<32x64xf32>
    %c64_i32 = arith.constant 64 : i32
    %49 = tpu.dynamic_rotate %42 by %c64_i32 dim 1 : vector<32x128xf32>, i32 -> vector<32x128xf32>
    %50 = vector.extract_strided_slice %49 {offsets = [0, 0], sizes = [32, 64], strides = [1, 1]} : vector<32x128xf32> to vector<32x64xf32>
    %cst_29 = arith.constant 0.000000e+00 : f32
    %51 = vector.broadcast %cst_29 : f32 to vector<32x64xf32>
    %52 = arith.maximumf %50, %51 : vector<32x64xf32>
    %53 = vector.broadcast %cst_29 : f32 to vector<32x64xf32>
    %54 = arith.subf %50, %53 : vector<32x64xf32>
    %55 = arith.cmpf one, %54, %54 : vector<32x64xf32>
    %56 = vector.broadcast %cst_29 : f32 to vector<32x64xf32>
    %57 = arith.addf %50, %56 : vector<32x64xf32>
    %58 = math.absf %54 : vector<32x64xf32>
    %cst_30 = arith.constant 0.000000e+00 : f32
    %59 = vector.broadcast %cst_30 : f32 to vector<32x64xf32>
    %60 = arith.subf %59, %58 : vector<32x64xf32>
    %61 = math.exp %60 : vector<32x64xf32>
    %62 = math.log1p %61 : vector<32x64xf32>
    %63 = arith.addf %52, %62 : vector<32x64xf32>
    %64 = arith.select %55, %57, %63 : vector<32x64xi1>, vector<32x64xf32>
    %65 = arith.mulf %48, %64 : vector<32x64xf32>
    %66 = arith.truncf %65 : vector<32x64xf32> to vector<32x64xbf16>
    %cst_31 = arith.constant dense<0.000000e+00> : vector<12x64xf32>
    %67 = tpu.matmul %25, %66, %cst_31 {dimension_numbers = #tpu.dot_dimension_numbers<[1], [0], [0], [1], [0, 0, 1, 1], [], []>} : vector<12x32xbf16>, vector<32x64xbf16>, vector<12x64xf32> -> vector<12x64xf32>
    %cst_32 = arith.constant dense<0.000000e+00> : vector<64xf32>
    %68 = vector.multi_reduction <add>, %67, %cst_32 [0] : vector<12x64xf32> to vector<64xf32>
    %69 = vector.shape_cast %68 : vector<64xf32> to vector<1x64xf32>
    %cst_33 = arith.constant 1.200000e+01 : f32
    %70 = vector.broadcast %cst_33 : f32 to vector<1x64xf32>
    %71 = arith.divf %69, %70 : vector<1x64xf32>
    %72 = arith.mulf %67, %67 : vector<12x64xf32>
    %cst_34 = arith.constant dense<0.000000e+00> : vector<64xf32>
    %73 = vector.multi_reduction <add>, %72, %cst_34 [0] : vector<12x64xf32> to vector<64xf32>
    %74 = vector.shape_cast %73 : vector<64xf32> to vector<1x64xf32>
    %cst_35 = arith.constant 1.200000e+01 : f32
    %75 = vector.broadcast %cst_35 : f32 to vector<1x64xf32>
    %76 = arith.divf %74, %75 : vector<1x64xf32>
    %77 = arith.mulf %71, %71 : vector<1x64xf32>
    %78 = arith.subf %76, %77 : vector<1x64xf32>
    %cst_36 = arith.constant 0.000000e+00 : f32
    %79 = vector.broadcast %cst_36 : f32 to vector<1x64xf32>
    %80 = arith.maximumf %78, %79 : vector<1x64xf32>
    %81 = vector.broadcast %71 : vector<1x64xf32> to vector<12x64xf32>
    %82 = arith.subf %67, %81 : vector<12x64xf32>
    %cst_37 = arith.constant 9.99999974E-6 : f32
    %83 = vector.broadcast %cst_37 : f32 to vector<1x64xf32>
    %84 = arith.addf %80, %83 : vector<1x64xf32>
    %85 = math.rsqrt %84 : vector<1x64xf32>
    %86 = vector.broadcast %85 : vector<1x64xf32> to vector<12x64xf32>
    %87 = arith.mulf %82, %86 : vector<12x64xf32>
    %88 = vector.broadcast %9 : vector<1x64xf32> to vector<12x64xf32>
    %89 = arith.mulf %87, %88 : vector<12x64xf32>
    %90 = vector.broadcast %10 : vector<1x64xf32> to vector<12x64xf32>
    %91 = arith.addf %89, %90 : vector<12x64xf32>
    %92 = arith.addf %91, %19 : vector<12x64xf32>
    %93 = arith.truncf %92 : vector<12x64xf32> to vector<12x64xbf16>
    %cst_38 = arith.constant dense<0.000000e+00> : vector<12x128xf32>
    %94 = tpu.matmul %93, %3, %cst_38 {dimension_numbers = #tpu.dot_dimension_numbers<[1], [0], [0], [1], [0, 0, 1, 1], [], []>} : vector<12x64xbf16>, vector<64x128xbf16>, vector<12x128xf32> -> vector<12x128xf32>
    %cst_39 = arith.constant dense<0.000000e+00> : vector<12x128xf32>
    %95 = tpu.matmul %93, %4, %cst_39 {dimension_numbers = #tpu.dot_dimension_numbers<[1], [0], [0], [1], [0, 0, 1, 1], [], []>} : vector<12x64xbf16>, vector<64x128xbf16>, vector<12x128xf32> -> vector<12x128xf32>
    %96 = arith.truncf %94 : vector<12x128xf32> to vector<12x128xbf16>
    %cst_40 = arith.constant dense<0.000000e+00> : vector<32x128xf32>
    %97 = tpu.matmul %25, %96, %cst_40 {dimension_numbers = #tpu.dot_dimension_numbers<[0], [0], [1], [1], [0, 1, 1, 1], [], []>} : vector<12x32xbf16>, vector<12x128xbf16>, vector<32x128xf32> -> vector<32x128xf32>
    %98 = arith.truncf %95 : vector<12x128xf32> to vector<12x128xbf16>
    %cst_41 = arith.constant dense<0.000000e+00> : vector<32x128xf32>
    %99 = tpu.matmul %30, %98, %cst_41 {dimension_numbers = #tpu.dot_dimension_numbers<[0], [0], [1], [1], [0, 1, 1, 1], [], []>} : vector<12x32xbf16>, vector<12x128xbf16>, vector<32x128xf32> -> vector<32x128xf32>
    %100 = arith.addf %97, %99 : vector<32x128xf32>
    %101 = arith.addf %100, %33 : vector<32x128xf32>
    %102 = vector.extract_strided_slice %101 {offsets = [0, 0], sizes = [32, 64], strides = [1, 1]} : vector<32x128xf32> to vector<32x64xf32>
    %103 = arith.negf %102 : vector<32x64xf32>
    %104 = math.exp %103 : vector<32x64xf32>
    %cst_42 = arith.constant 1.000000e+00 : f32
    %105 = vector.broadcast %cst_42 : f32 to vector<32x64xf32>
    %106 = arith.addf %105, %104 : vector<32x64xf32>
    %107 = arith.divf %105, %106 : vector<32x64xf32>
    %c64_i32_43 = arith.constant 64 : i32
    %108 = tpu.dynamic_rotate %101 by %c64_i32_43 dim 1 : vector<32x128xf32>, i32 -> vector<32x128xf32>
    %109 = vector.extract_strided_slice %108 {offsets = [0, 0], sizes = [32, 64], strides = [1, 1]} : vector<32x128xf32> to vector<32x64xf32>
    %cst_44 = arith.constant 0.000000e+00 : f32
    %110 = vector.broadcast %cst_44 : f32 to vector<32x64xf32>
    %111 = arith.maximumf %109, %110 : vector<32x64xf32>
    %112 = vector.broadcast %cst_44 : f32 to vector<32x64xf32>
    %113 = arith.subf %109, %112 : vector<32x64xf32>
    %114 = arith.cmpf one, %113, %113 : vector<32x64xf32>
    %115 = vector.broadcast %cst_44 : f32 to vector<32x64xf32>
    %116 = arith.addf %109, %115 : vector<32x64xf32>
    %117 = math.absf %113 : vector<32x64xf32>
    %cst_45 = arith.constant 0.000000e+00 : f32
    %118 = vector.broadcast %cst_45 : f32 to vector<32x64xf32>
    %119 = arith.subf %118, %117 : vector<32x64xf32>
    %120 = math.exp %119 : vector<32x64xf32>
    %121 = math.log1p %120 : vector<32x64xf32>
    %122 = arith.addf %111, %121 : vector<32x64xf32>
    %123 = arith.select %114, %116, %122 : vector<32x64xi1>, vector<32x64xf32>
    %124 = arith.mulf %107, %123 : vector<32x64xf32>
    %125 = arith.truncf %124 : vector<32x64xf32> to vector<32x64xbf16>
    %cst_46 = arith.constant dense<0.000000e+00> : vector<12x64xf32>
    %126 = tpu.matmul %25, %125, %cst_46 {dimension_numbers = #tpu.dot_dimension_numbers<[1], [0], [0], [1], [0, 0, 1, 1], [], []>} : vector<12x32xbf16>, vector<32x64xbf16>, vector<12x64xf32> -> vector<12x64xf32>
    %cst_47 = arith.constant dense<0.000000e+00> : vector<64xf32>
    %127 = vector.multi_reduction <add>, %126, %cst_47 [0] : vector<12x64xf32> to vector<64xf32>
    %128 = vector.shape_cast %127 : vector<64xf32> to vector<1x64xf32>
    %cst_48 = arith.constant 1.200000e+01 : f32
    %129 = vector.broadcast %cst_48 : f32 to vector<1x64xf32>
    %130 = arith.divf %128, %129 : vector<1x64xf32>
    %131 = arith.mulf %126, %126 : vector<12x64xf32>
    %cst_49 = arith.constant dense<0.000000e+00> : vector<64xf32>
    %132 = vector.multi_reduction <add>, %131, %cst_49 [0] : vector<12x64xf32> to vector<64xf32>
    %133 = vector.shape_cast %132 : vector<64xf32> to vector<1x64xf32>
    %cst_50 = arith.constant 1.200000e+01 : f32
    %134 = vector.broadcast %cst_50 : f32 to vector<1x64xf32>
    %135 = arith.divf %133, %134 : vector<1x64xf32>
    %136 = arith.mulf %130, %130 : vector<1x64xf32>
    %137 = arith.subf %135, %136 : vector<1x64xf32>
    %cst_51 = arith.constant 0.000000e+00 : f32
    %138 = vector.broadcast %cst_51 : f32 to vector<1x64xf32>
    %139 = arith.maximumf %137, %138 : vector<1x64xf32>
    %140 = vector.broadcast %130 : vector<1x64xf32> to vector<12x64xf32>
    %141 = arith.subf %126, %140 : vector<12x64xf32>
    %cst_52 = arith.constant 9.99999974E-6 : f32
    %142 = vector.broadcast %cst_52 : f32 to vector<1x64xf32>
    %143 = arith.addf %139, %142 : vector<1x64xf32>
    %144 = math.rsqrt %143 : vector<1x64xf32>
    %145 = vector.broadcast %144 : vector<1x64xf32> to vector<12x64xf32>
    %146 = arith.mulf %141, %145 : vector<12x64xf32>
    %147 = vector.broadcast %9 : vector<1x64xf32> to vector<12x64xf32>
    %148 = arith.mulf %146, %147 : vector<12x64xf32>
    %149 = vector.broadcast %10 : vector<1x64xf32> to vector<12x64xf32>
    %150 = arith.addf %148, %149 : vector<12x64xf32>
    %151 = arith.addf %150, %92 : vector<12x64xf32>
    %152 = arith.truncf %151 : vector<12x64xf32> to vector<12x64xbf16>
    %cst_53 = arith.constant dense<0.000000e+00> : vector<12x128xf32>
    %153 = tpu.matmul %152, %3, %cst_53 {dimension_numbers = #tpu.dot_dimension_numbers<[1], [0], [0], [1], [0, 0, 1, 1], [], []>} : vector<12x64xbf16>, vector<64x128xbf16>, vector<12x128xf32> -> vector<12x128xf32>
    %cst_54 = arith.constant dense<0.000000e+00> : vector<12x128xf32>
    %154 = tpu.matmul %152, %4, %cst_54 {dimension_numbers = #tpu.dot_dimension_numbers<[1], [0], [0], [1], [0, 0, 1, 1], [], []>} : vector<12x64xbf16>, vector<64x128xbf16>, vector<12x128xf32> -> vector<12x128xf32>
    %155 = arith.truncf %153 : vector<12x128xf32> to vector<12x128xbf16>
    %cst_55 = arith.constant dense<0.000000e+00> : vector<32x128xf32>
    %156 = tpu.matmul %25, %155, %cst_55 {dimension_numbers = #tpu.dot_dimension_numbers<[0], [0], [1], [1], [0, 1, 1, 1], [], []>} : vector<12x32xbf16>, vector<12x128xbf16>, vector<32x128xf32> -> vector<32x128xf32>
    %157 = arith.truncf %154 : vector<12x128xf32> to vector<12x128xbf16>
    %cst_56 = arith.constant dense<0.000000e+00> : vector<32x128xf32>
    %158 = tpu.matmul %30, %157, %cst_56 {dimension_numbers = #tpu.dot_dimension_numbers<[0], [0], [1], [1], [0, 1, 1, 1], [], []>} : vector<12x32xbf16>, vector<12x128xbf16>, vector<32x128xf32> -> vector<32x128xf32>
    %159 = arith.addf %156, %158 : vector<32x128xf32>
    %160 = arith.addf %159, %33 : vector<32x128xf32>
    %161 = vector.extract_strided_slice %160 {offsets = [0, 0], sizes = [32, 64], strides = [1, 1]} : vector<32x128xf32> to vector<32x64xf32>
    %162 = arith.negf %161 : vector<32x64xf32>
    %163 = math.exp %162 : vector<32x64xf32>
    %cst_57 = arith.constant 1.000000e+00 : f32
    %164 = vector.broadcast %cst_57 : f32 to vector<32x64xf32>
    %165 = arith.addf %164, %163 : vector<32x64xf32>
    %166 = arith.divf %164, %165 : vector<32x64xf32>
    %c64_i32_58 = arith.constant 64 : i32
    %167 = tpu.dynamic_rotate %160 by %c64_i32_58 dim 1 : vector<32x128xf32>, i32 -> vector<32x128xf32>
    %168 = vector.extract_strided_slice %167 {offsets = [0, 0], sizes = [32, 64], strides = [1, 1]} : vector<32x128xf32> to vector<32x64xf32>
    %cst_59 = arith.constant 0.000000e+00 : f32
    %169 = vector.broadcast %cst_59 : f32 to vector<32x64xf32>
    %170 = arith.maximumf %168, %169 : vector<32x64xf32>
    %171 = vector.broadcast %cst_59 : f32 to vector<32x64xf32>
    %172 = arith.subf %168, %171 : vector<32x64xf32>
    %173 = arith.cmpf one, %172, %172 : vector<32x64xf32>
    %174 = vector.broadcast %cst_59 : f32 to vector<32x64xf32>
    %175 = arith.addf %168, %174 : vector<32x64xf32>
    %176 = math.absf %172 : vector<32x64xf32>
    %cst_60 = arith.constant 0.000000e+00 : f32
    %177 = vector.broadcast %cst_60 : f32 to vector<32x64xf32>
    %178 = arith.subf %177, %176 : vector<32x64xf32>
    %179 = math.exp %178 : vector<32x64xf32>
    %180 = math.log1p %179 : vector<32x64xf32>
    %181 = arith.addf %170, %180 : vector<32x64xf32>
    %182 = arith.select %173, %175, %181 : vector<32x64xi1>, vector<32x64xf32>
    %183 = arith.mulf %166, %182 : vector<32x64xf32>
    %184 = arith.truncf %183 : vector<32x64xf32> to vector<32x64xbf16>
    %cst_61 = arith.constant dense<0.000000e+00> : vector<12x64xf32>
    %185 = tpu.matmul %25, %184, %cst_61 {dimension_numbers = #tpu.dot_dimension_numbers<[1], [0], [0], [1], [0, 0, 1, 1], [], []>} : vector<12x32xbf16>, vector<32x64xbf16>, vector<12x64xf32> -> vector<12x64xf32>
    %cst_62 = arith.constant dense<0.000000e+00> : vector<64xf32>
    %186 = vector.multi_reduction <add>, %185, %cst_62 [0] : vector<12x64xf32> to vector<64xf32>
    %187 = vector.shape_cast %186 : vector<64xf32> to vector<1x64xf32>
    %cst_63 = arith.constant 1.200000e+01 : f32
    %188 = vector.broadcast %cst_63 : f32 to vector<1x64xf32>
    %189 = arith.divf %187, %188 : vector<1x64xf32>
    %190 = arith.mulf %185, %185 : vector<12x64xf32>
    %cst_64 = arith.constant dense<0.000000e+00> : vector<64xf32>
    %191 = vector.multi_reduction <add>, %190, %cst_64 [0] : vector<12x64xf32> to vector<64xf32>
    %192 = vector.shape_cast %191 : vector<64xf32> to vector<1x64xf32>
    %cst_65 = arith.constant 1.200000e+01 : f32
    %193 = vector.broadcast %cst_65 : f32 to vector<1x64xf32>
    %194 = arith.divf %192, %193 : vector<1x64xf32>
    %195 = arith.mulf %189, %189 : vector<1x64xf32>
    %196 = arith.subf %194, %195 : vector<1x64xf32>
    %cst_66 = arith.constant 0.000000e+00 : f32
    %197 = vector.broadcast %cst_66 : f32 to vector<1x64xf32>
    %198 = arith.maximumf %196, %197 : vector<1x64xf32>
    %199 = vector.broadcast %189 : vector<1x64xf32> to vector<12x64xf32>
    %200 = arith.subf %185, %199 : vector<12x64xf32>
    %cst_67 = arith.constant 9.99999974E-6 : f32
    %201 = vector.broadcast %cst_67 : f32 to vector<1x64xf32>
    %202 = arith.addf %198, %201 : vector<1x64xf32>
    %203 = math.rsqrt %202 : vector<1x64xf32>
    %204 = vector.broadcast %203 : vector<1x64xf32> to vector<12x64xf32>
    %205 = arith.mulf %200, %204 : vector<12x64xf32>
    %206 = vector.broadcast %9 : vector<1x64xf32> to vector<12x64xf32>
    %207 = arith.mulf %205, %206 : vector<12x64xf32>
    %208 = vector.broadcast %10 : vector<1x64xf32> to vector<12x64xf32>
    %209 = arith.addf %207, %208 : vector<12x64xf32>
    %210 = arith.addf %209, %151 : vector<12x64xf32>
    %211 = tpu.iota {dimensions = array<i32: 0>} : vector<2x12xi32>
    %212 = vector.broadcast %16 : vector<1x12xi32> to vector<2x12xi32>
    %213 = arith.cmpi eq, %211, %212 : vector<2x12xi32>
    %214 = arith.extui %213 : vector<2x12xi1> to vector<2x12xi32>
    %215 = arith.sitofp %214 : vector<2x12xi32> to vector<2x12xf32>
    %cst_68 = arith.constant dense<0.000000e+00> : vector<2xf32>
    %216 = vector.multi_reduction <add>, %215, %cst_68 [1] : vector<2x12xf32> to vector<2xf32>
    %217 = vector.shape_cast %216 : vector<2xf32> to vector<2x1xf32>
    %cst_69 = arith.constant 1.000000e+00 : f32
    %218 = vector.broadcast %cst_69 : f32 to vector<2x1xf32>
    %219 = arith.maximumf %217, %218 : vector<2x1xf32>
    %220 = arith.truncf %215 : vector<2x12xf32> to vector<2x12xbf16>
    %221 = arith.truncf %210 : vector<12x64xf32> to vector<12x64xbf16>
    %cst_70 = arith.constant dense<0.000000e+00> : vector<2x64xf32>
    %222 = tpu.matmul %220, %221, %cst_70 {dimension_numbers = #tpu.dot_dimension_numbers<[1], [0], [0], [1], [0, 0, 1, 1], [], []>} : vector<2x12xbf16>, vector<12x64xbf16>, vector<2x64xf32> -> vector<2x64xf32>
    %223 = vector.broadcast %219 : vector<2x1xf32> to vector<2x64xf32>
    %224 = arith.divf %222, %223 : vector<2x64xf32>
    %cst_71 = arith.constant 0.000000e+00 : f32
    %225 = vector.broadcast %cst_71 : f32 to vector<2x64xf32>
    %226 = arith.maximumf %224, %225 : vector<2x64xf32>
    %227 = vector.broadcast %cst_71 : f32 to vector<2x64xf32>
    %228 = arith.subf %224, %227 : vector<2x64xf32>
    %229 = arith.cmpf one, %228, %228 : vector<2x64xf32>
    %230 = vector.broadcast %cst_71 : f32 to vector<2x64xf32>
    %231 = arith.addf %224, %230 : vector<2x64xf32>
    %232 = math.absf %228 : vector<2x64xf32>
    %cst_72 = arith.constant 0.000000e+00 : f32
    %233 = vector.broadcast %cst_72 : f32 to vector<2x64xf32>
    %234 = arith.subf %233, %232 : vector<2x64xf32>
    %235 = math.exp %234 : vector<2x64xf32>
    %236 = math.log1p %235 : vector<2x64xf32>
    %237 = arith.addf %226, %236 : vector<2x64xf32>
    %238 = arith.select %229, %231, %237 : vector<2x64xi1>, vector<2x64xf32>
    %239 = arith.truncf %238 : vector<2x64xf32> to vector<2x64xbf16>
    %cst_73 = arith.constant dense<0.000000e+00> : vector<2x128xf32>
    %240 = tpu.matmul %239, %6, %cst_73 {dimension_numbers = #tpu.dot_dimension_numbers<[1], [0], [0], [1], [0, 0, 1, 1], [], []>} : vector<2x64xbf16>, vector<64x128xbf16>, vector<2x128xf32> -> vector<2x128xf32>
    %241 = vector.broadcast %11 : vector<1x128xf32> to vector<2x128xf32>
    %242 = arith.addf %240, %241 : vector<2x128xf32>
    %cst_74 = arith.constant 0.000000e+00 : f32
    %243 = vector.broadcast %cst_74 : f32 to vector<2x128xf32>
    %244 = arith.maximumf %242, %243 : vector<2x128xf32>
    %245 = vector.broadcast %cst_74 : f32 to vector<2x128xf32>
    %246 = arith.subf %242, %245 : vector<2x128xf32>
    %247 = arith.cmpf one, %246, %246 : vector<2x128xf32>
    %248 = vector.broadcast %cst_74 : f32 to vector<2x128xf32>
    %249 = arith.addf %242, %248 : vector<2x128xf32>
    %250 = math.absf %246 : vector<2x128xf32>
    %cst_75 = arith.constant 0.000000e+00 : f32
    %251 = vector.broadcast %cst_75 : f32 to vector<2x128xf32>
    %252 = arith.subf %251, %250 : vector<2x128xf32>
    %253 = math.exp %252 : vector<2x128xf32>
    %254 = math.log1p %253 : vector<2x128xf32>
    %255 = arith.addf %244, %254 : vector<2x128xf32>
    %256 = arith.select %247, %249, %255 : vector<2x128xi1>, vector<2x128xf32>
    %257 = vector.broadcast %12 : vector<1x128xf32> to vector<2x128xf32>
    %258 = arith.mulf %256, %257 : vector<2x128xf32>
    %cst_76 = arith.constant dense<0.000000e+00> : vector<2xf32>
    %259 = vector.multi_reduction <add>, %258, %cst_76 [1] : vector<2x128xf32> to vector<2xf32>
    %260 = vector.shape_cast %259 : vector<2xf32> to vector<2x1xf32>
    %261 = vector.broadcast %13 : vector<1x1xf32> to vector<2x1xf32>
    %262 = arith.addf %260, %261 : vector<2x1xf32>
    %c0_77 = arith.constant 0 : index
    %c0_78 = arith.constant 0 : index
    %263 = vector.load %arg5[%c0_77, %c0_78] : memref<2x1xf32, #tpu.memory_space<vmem>>, vector<2x1xf32>
    tpu.vector_store %arg5[%c0_77, %c0_78], %262 {strides = array<i32>} : memref<2x1xf32, #tpu.memory_space<vmem>>, vector<2x1xf32>,
    return
  }
  func.func @transform_0(%arg0: i32) -> (i32, i32) {
    %c0_i32 = arith.constant 0 : i32
    %c0_i32_0 = arith.constant 0 : i32
    %c0_i32_1 = arith.constant 0 : i32
    return %c0_i32, %c0_i32_0 : i32, i32
  }
  func.func @transform_1(%arg0: i32) -> (i32, i32) {
    %c0_i32 = arith.constant 0 : i32
    %c0_i32_0 = arith.constant 0 : i32
    %c0_i32_1 = arith.constant 0 : i32
    return %c0_i32, %c0_i32_0 : i32, i32
  }
  func.func @transform_2(%arg0: i32) -> (i32, i32) {
    %c0_i32 = arith.constant 0 : i32
    %c0_i32_0 = arith.constant 0 : i32
    %c0_i32_1 = arith.constant 0 : i32
    return %c0_i32, %c0_i32_0 : i32, i32
  }
  func.func @transform_3(%arg0: i32) -> (i32, i32) {
    %c0_i32 = arith.constant 0 : i32
    %c0_i32_0 = arith.constant 0 : i32
    %c0_i32_1 = arith.constant 0 : i32
    return %c0_i32, %c0_i32_0 : i32, i32
  }
  func.func @transform_4(%arg0: i32) -> (i32, i32) {
    %c0_i32 = arith.constant 0 : i32
    %c0_i32_0 = arith.constant 0 : i32
    %c0_i32_1 = arith.constant 0 : i32
    return %c0_i32, %c0_i32_0 : i32, i32
  }
}

</mosaic_0001>

<bundles_post_ra>
// kernel: my_model_forward.1
= control target key start
LH: loop header
LB: loop body
LE: loop exit
PB: predicated region body
PF: predicated region fallthrough
CT: control target
= control target key end

     0   :  { %v91_v0 = vlaneseq  ;;  %vm73_vm0 = vcmask 130048   ;;  %v1571_v11 = vmov 0.0   ;;  %vm176_vm5 = vcmask 523264   ;;  %s1572_s24 = smov 64   ;;  %s2350_s2 = inlined_call_operand.vmem [shape: bf16[224,128], index: 2, kind: input, shape index: {}]   ;;  %s2351_s0 = inlined_call_operand.vmem [shape: bf16[48,128], index: 0, kind: input, shape index: {}]   ;;  %s2352_s1 = inlined_call_operand.vmem [shape: s32[8,128], index: 1, kind: input, shape index: {}]   ;;  %s2353_s3 = inlined_call_operand.vmem [shape: f32[8,128], index: 3, kind: input, shape index: {}]   ;;  %s2354_s4 = inlined_call_operand.vmem [shape: f32[2,1], index: 4, kind: output, shape index: {}]  }
   0x1   :  { %v1419_v1 = vld [vmem:[%s2350_s2] sm:$0xff]  ;;  %v1641_v18 = vld [vmem:[%s2350_s2 + $0x18] sm:$0xff]  ;;  %v1653_v20 = vld [vmem:[%s2350_s2 + $0x10] sm:$0xff]  ;;  %vm128_vm6 = vcmask 1043456   ;;  %vm121_vm7 = vcmask 64512   ;;  %vm257_vm8 = vcmask 1045504  }
   0x2   :  { %v1311_v2 = vld [vmem:[%s2351_s0] sm:$0xf]  ;;  %v1416_v3 = vld [vmem:[%s2351_s0] sm:$0x30]  ;;  %v1608_v5 = vshrl.u32 %v91_v0, 7  ;;  %84 = vmatpush.bf16.msra.mxu0 %v1419_v1  ;;  %v1646_v19 = vld [vmem:[%s2350_s2 + $0x38] sm:$0xff] }
   0x3   :  { %v1312_v4 = vor.u32 %v1416_v3, %v1311_v2  ;;  %v1613_v6 = vld [vmem:[%s2350_s2 + $0x20] sm:$0xff]  ;;  %v1658_v21 = vld [vmem:[%s2350_s2 + $0x30] sm:$0xff]  ;;  %v1665_v22 = vld [vmem:[%s2350_s2 + $0x8] sm:$0xff]  ;;  %vm250_vm9 = vcmask 97280  }
   0x4   :  { %v1441_v7 = vld [vmem:[%s2352_s1 + $0x1] ss:$0 sm:$0xff]  ;;  %v1442_v8 = vld [vmem:[%s2352_s1] ss:$0 sm:$0xff]  ;;  %v93_v10 = vadd.s32 8, %v1608_v5  ;;  %184 = vmatpush.bf16.msra.mxu2 %v1613_v6  ;;  %v1670_v23 = vld [vmem:[%s2350_s2 + $0x28] sm:$0xff] }
   0x5   :  { %v1624_v9 = vld [vmem:[%s2350_s2 + $0x40] sm:$0xff]  ;;  %vm95_vm1 = vcmp.eq.s32.totalorder %v1608_v5, %v1441_v7  ;;  %vm103_vm2 = vcmp.eq.s32.totalorder %v1608_v5, %v1442_v8  ;;  %1317 = vmatmul.msk.bf16.vlgmr.msra.gmra.mxu0 %vm73_vm0, %v1312_v4  ;;  %v42_v30 = vld [vmem:[%s2350_s2 + $0x48] sm:$0xf]  ;;  %v1418_v33 = vld [vmem:[%s2351_s0 + $0x10] sm:$0xff] }
   0x6   :  { %222 = vmatpush.bf16.msra.mxu3 %v1624_v9  ;;  %vm96_vm3 = vcmp.eq.s32.totalorder %v93_v10, %v1441_v7  ;;  %v1318_v12 = vsel %vm95_vm1, 1.0, %v1571_v11  ;;  %vm104_vm4 = vcmp.eq.s32.totalorder %v93_v10, %v1442_v8  ;;  %v1320_v13 = vsel %vm103_vm2, 1.0, %v1571_v11  ;;  %v1443_v25 = vld [vmem:[%s2353_s3] ss:$0 sm:$0xff]  ;;  %v1417_v32 = vld [vmem:[%s2351_s0 + $0x8] sm:$0xff] }
   0x7   :  { %v1319_v14 = vsel %vm96_vm3, 1.0, %v1571_v11  ;;  %v1321_v15 = vsel %vm104_vm4, 1.0, %v1571_v11  ;;  %v130_v31 = vsel %vm128_vm6, %v42_v30, 0  ;;  %v1444_v51 = vld [vmem:[%s2353_s3 + $0x1] ss:$0 sm:$0xff] }
   0x8   :  { %v1635_v16 = vpack.c.bf16 %v1319_v14, %v1318_v12  ;;  %v109_v17 = vpack.c.bf16 %v1321_v15, %v1320_v13  ;;  %185 = vmatpush.bf16.msra.mxu2 %v1641_v18  ;;  %139 = vmatpush.bf16.msra.mxu1 %v130_v31 }
   0xa   :  { %1436 = vxpose.binary.xlu0.c.b16.start.end [1/2] (short) (narrow) %v109_v17, %v1635_v16, 32 }
   0xb   :  { %223 = vmatpush.bf16.msra.mxu3 %v1646_v19  ;;  %1330 = vmatmul.msk.bf16.vlgmr.msra.gmra.mxu1 %vm121_vm7, %v1417_v32 }
   0xc   :  { %186 = vmatpush.bf16.msra.mxu2 %v1653_v20  ;;  %572 = vmatpush.bf16.msrb.mxu1 %v1613_v6 }
   0xf   :  { %224 = vmatpush.bf16.msra.mxu3 %v1658_v21 }
  0x10   :  { %187 = vmatpush.bf16.msra.mxu2 %v1665_v22  ;;  %573 = vmatpush.bf16.msrb.mxu1 %v1641_v18 }
  0x13   :  { %225 = vmatpush.bf16.msra.mxu3 %v1670_v23 }
  0x14   :  { %574 = vmatpush.bf16.msrb.mxu1 %v1653_v20 }
  0x18   :  { %575 = vmatpush.bf16.msrb.mxu1 %v1665_v22 }
  0x1b   :  { %1331 = vmatmul.msk.bf16.gmra.mxu1 %vm121_vm7, %v1418_v33 }
  0x82   :  { %v86_v24 = vpop.f32.mrf.mxu0 }
  0x83   :  { %v1677_v27 = vadd.f32 %v1443_v25, %v86_v24 }
  0x88   :  { %v141_v46 = vpop.f32.mrf.mxu1 }
  0x89   :  { %v1731_v4 = vadd.f32 %v1444_v51, %v141_v46 }
  0x8a   :  { %v88_v26 = vpop.f32.mrf.mxu0 }
  0x8b   :  { %v1679_v28 = vadd.f32 %v1443_v25, %v88_v26 }
  0x8d   :  { %v151_v29 = vpack.c.bf16 %v1679_v28, %v1677_v27 }
  0x8f   :  { %1348 = vmatmul.msk.bf16.vlgmr.msra.gmra.mxu2 %vm176_vm5, %v151_v29  ;;  %1365 = vmatmul.msk.bf16.vlgmr.msra.gmra.mxu3 %vm176_vm5, %v151_v29 }
  0x90   :  { %v143_v49 = vpop.f32.mrf.mxu1 }
  0x91   :  { %v1719_v53 = vadd.f32 %v1444_v51, %v143_v49 }
  0x98   :  { %v146_v56 = vpop.f32.mrf.mxu1 }
  0x99   :  { %v1723_v58 = vadd.f32 %v1444_v51, %v146_v56 }
  0xa0   :  { %v148_v62 = vpop.f32.mrf.mxu1 }
  0xa1   :  { %v1727_v1 = vadd.f32 %v1444_v51, %v148_v62 }
  0xb6   :  { %v1698_v34 = vpop.trf.xlu0 }
  0xbe   :  { %v1700_v37 = vpop.trf.xlu0 }
  0xc6   :  { %v1708_v44 = vpop.trf.xlu0 }
  0xce   :  { %v1710_v45 = vpop.trf.xlu0 }
 0x112   :  { %v189_v35 = vpop.f32.mrf.mxu2  ;;  %v227_v36 = vpop.f32.mrf.mxu3 }
 0x11a   :  { %v191_v38 = vpop.f32.mrf.mxu2  ;;  %v229_v39 = vpop.f32.mrf.mxu3 }
 0x11b   :  { %v232_v40 = vpack.c.bf16 %v191_v38, %v189_v35  ;;  %v233_v41 = vpack.c.bf16 %v229_v39, %v227_v36 }
 0x11d   :  { %v259_v42 = vsel %vm257_vm8, %v233_v41, 0  ;;  %v303_v43 = vsel %vm257_vm8, %v232_v40, 0 }
 0x11e   :  { %268 = vmatpush.bf16.msrb.mxu0 %v259_v42  ;;  %312 = vmatpush.bf16.msrb.mxu2 %v303_v43 }
 0x121   :  { %1366 = vmatmul.msk.bf16.vlgmr.msrb.gmra.mxu0 %vm250_vm9, %v1700_v37  ;;  %1368 = vmatmul.msk.bf16.vlgmr.msrb.gmra.mxu2 %vm250_vm9, %v1698_v34 }
 0x131   :  { %1367 = vmatmul.msk.bf16.gmra.mxu0 %vm250_vm9, %v1710_v45  ;;  %1369 = vmatmul.msk.bf16.gmra.mxu2 %vm250_vm9, %v1708_v44 }
 0x19e   :  { %v270_v47 = vpop.f32.mrf.mxu0 }
 0x1a4   :  { %v314_v48 = vpop.f32.mrf.mxu2 }
 0x1a5   :  { %v315_v7 = vadd.f32 %v314_v48, %v270_v47 }
 0x1a6   :  { %v272_v50 = vpop.f32.mrf.mxu0 }
 0x1a7   :  { %v324_v8 = vadd.f32 %v315_v7, %v1731_v4 }
 0x1a9   :  { %v1370_v10 = vmul.f32 -1.442695, %v324_v8 }
 0x1ab   :  { %1451 = vpow2.f32 %v1370_v10 }
 0x1ac   :  { %v316_v52 = vpop.f32.mrf.mxu2 }
 0x1ad   :  { %v317_v54 = vadd.f32 %v316_v52, %v272_v50 }
 0x1ae   :  { %v275_v57 = vpop.f32.mrf.mxu0 }
 0x1af   :  { %v325_v55 = vadd.f32 %v317_v54, %v1719_v53 }
 0x1b1   :  { %406 = vrot.lane.b32.xlu2 %v325_v55, %s1572_s24  ;;  %v1371_v14 = vmul.f32 -1.442695, %v325_v55  ;;  %v1452_v17 = vpop.eup %1451 }
 0x1b2   :  { %v1738_v26 = vadd.f32 1.0, %v1452_v17 }
 0x1b4   :  { %v319_v59 = vpop.f32.mrf.mxu2  ;;  %vm349_vm2 = vweird.f32 %v1738_v26 }
 0x1b5   :  { %v320_v60 = vadd.f32 %v319_v59, %v275_v57 }
 0x1b6   :  { %v277_v63 = vpop.f32.mrf.mxu0 }
 0x1b7   :  { %v326_v61 = vadd.f32 %v320_v60, %v1723_v58 }
 0x1b9   :  { %408 = vrot.lane.b32.xlu0 %v326_v61, %s1572_s24  ;;  %v1372_v12 = vmul.f32 -1.442695, %v326_v61 }
 0x1bb   :  { %1453 = vpow2.f32 %v1372_v12 }
 0x1bc   :  { %v321_v0 = vpop.f32.mrf.mxu2 }
 0x1bd   :  { %v322_v2 = vadd.f32 %v321_v0, %v277_v63 }
 0x1bf   :  { %v327_v3 = vadd.f32 %v322_v2, %v1727_v1 }
 0x1c1   :  { %410 = vrot.lane.b32.xlu1 %v327_v3, %s1572_s24  ;;  %v1373_v13 = vmul.f32 -1.442695, %v327_v3  ;;  %v1454_v25 = vpop.eup %1453 }
 0x1c2   :  { %v1743_v33 = vadd.f32 1.0, %v1454_v25 }
 0x1c3   :  { %1455 = vpow2.f32 %v1373_v13 }
 0x1c4   :  { %1457 = vpow2.f32 %v1371_v14  ;;  %v383_v14 = vand.u32 2147483647, %v1743_v33  ;;  %vm379_vm10 = vweird.f32 %v1743_v33 }
 0x1c5   :  { %1459 = vrcp.f32 %v1738_v26 }
 0x1c6   :  { %1461 = vrcp.f32 %v1743_v33  ;;  %vm1793_vm12 = vcmp.eq.f32.partialorder %v383_v14, 8.507059e+37 }
 0x1c9   :  { %404 = vrot.lane.b32.xlu1 %v324_v8, %s1572_s24  ;;  %v1456_v30 = vpop.eup %1455 }
 0x1ca   :  { %v1458_v35 = vpop.eup %1457  ;;  %v1746_v38 = vadd.f32 1.0, %v1456_v30 }
 0x1cb   :  { %v1748_v41 = vadd.f32 1.0, %v1458_v35  ;;  %v1754_v43 = vpop.eup %1459 }
 0x1cc   :  { %v1758_v48 = vpop.eup %1461  ;;  %v345_v49 = vmul.f32 %v1754_v43, %v1738_v26  ;;  %vm394_vm14 = vweird.f32 %v1746_v38  ;;  %vm350_vm15 = vweird.f32 %v1754_v43  ;;  %v400_v14 = vand.u32 2147483648, %v1746_v38 }
 0x1cd   :  { %v375_v59 = vmul.f32 %v1758_v48, %v1743_v33  ;;  %vm380_vm13 = vweird.f32 %v1758_v48 }
 0x1ce   :  { %v346_v60 = vsub.f32 1.0, %v345_v49  ;;  %vm1819_vm3 = vmor %vm379_vm10, %vm380_vm13 }
 0x1cf   :  { %v376_v7 = vsub.f32 1.0, %v375_v59  ;;  %v370_v59 = vand.u32 2147483648, %v1748_v41 }
 0x1d0   :  { %v347_v8 = vmul.f32 %v1754_v43, %v346_v60 }
 0x20b   :  { %v1735_v15 = vpop.permute.xlu2 %406 }
 0x20c   :  { %v425_v24 = vand.u32 2147483647, %v1735_v15 }
 0x20e   :  { %v429_v31 = vsub.f32 0.0, %v425_v24 }
 0x210   :  { %v434_v39 = vmul.f32 1.442695, %v429_v31  ;;  %v385_v31 = vand.u32 2147483648, %v1743_v33 }
 0x212   :  { %v386_v60 = vor.u32 1.1754944e-38, %v385_v31 }
 0x22b   :  { %v1740_v29 = vpop.permute.xlu0 %408 }
 0x22c   :  { %v426_v32 = vand.u32 2147483647, %v1740_v29  ;;  %vm418_vm7 = vcmp.ne.f32.partialorder %v1740_v29, %v1740_v29 }
 0x22e   :  { %v430_v36 = vsub.f32 0.0, %v426_v32 }
 0x230   :  { %v436_v40 = vmul.f32 1.442695, %v430_v36 }
 0x232   :  { %1463 = vpow2.f32 %v436_v40  ;;  %v1783_v40 = vadd.f32 %v1754_v43, %v347_v8 }
 0x233   :  { %1465 = vrcp.f32 %v1746_v38  ;;  %v1752_v42 = vpop.permute.xlu1 %410 }
 0x234   :  { %1467 = vpow2.f32 %v434_v39  ;;  %v427_v46 = vand.u32 2147483647, %v1752_v42  ;;  %v377_v39 = vmul.f32 %v1758_v48, %v376_v7 }
 0x235   :  { %1469 = vrcp.f32 %v1748_v41 }
 0x236   :  { %v431_v47 = vsub.f32 0.0, %v427_v46  ;;  %v353_v46 = vand.u32 2147483647, %v1738_v26  ;;  %v378_v7 = vadd.f32 %v1758_v48, %v377_v39 }
 0x238   :  { %v1464_v50 = vpop.eup %1463  ;;  %v438_v51 = vmul.f32 1.442695, %v431_v47 }
 0x239   :  { %v1762_v52 = vpop.eup %1465  ;;  %v458_v54 = vadd.f32 1.0, %v1464_v50  ;;  %v461_v61 = vmul.f32 -0.5, %v1464_v50  ;;  %v464_v25 = vand.u32 2147483647, %v1464_v50 }
 0x23a   :  { %v1764_v55 = vpop.eup %1467  ;;  %1471 = vpow2.f32 %v438_v51  ;;  %v390_v63 = vmul.f32 %v1762_v52, %v1746_v38  ;;  %vm395_vm0 = vweird.f32 %v1762_v52 }
 0x23b   :  { %v1766_v56 = vpop.eup %1469  ;;  %1473 = vlog2.f32 %v458_v54  ;;  %v1768_v57 = vpop.permute.xlu1 %404  ;;  %v449_v0 = vadd.f32 1.0, %v1764_v55  ;;  %v462_v12 = vadd.f32 1.0, %v461_v61  ;;  %v452_v47 = vmul.f32 -0.5, %v1764_v55  ;;  %vm1831_vm6 = vmor %vm394_vm14, %vm395_vm0 }
 0x23c   :  { %v424_v62 = vand.u32 2147483647, %v1768_v57  ;;  %v360_v3 = vmul.f32 %v1766_v56, %v1748_v41  ;;  %v391_v17 = vsub.f32 1.0, %v390_v63  ;;  %vm1789_vm11 = vcmp.lt.f32.partialorder %v464_v25, 0.0004427343  ;;  %vm1865_vm14 = vmor %vm349_vm2, %vm350_vm15 }
 0x23d   :  { %1475 = vlog2.f32 %v449_v0  ;;  %v463_v49 = vmul.f32 %v1464_v50, %v462_v12  ;;  %v398_v61 = vand.u32 2147483647, %v1746_v38  ;;  %v453_v12 = vadd.f32 1.0, %v452_v47 }
 0x23e   :  { %v428_v2 = vsub.f32 0.0, %v424_v62  ;;  %v361_v36 = vsub.f32 1.0, %v360_v3  ;;  %v392_v51 = vmul.f32 %v1762_v52, %v391_v17  ;;  %vm365_vm13 = vweird.f32 %v1766_v56 }
 0x23f   :  { %vm1810_vm1 = vcmp.eq.f32.partialorder %v398_v61, 8.507059e+37  ;;  %v454_v33 = vmul.f32 %v1764_v55, %v453_v12  ;;  %vm416_vm15 = vcmp.ne.f32.partialorder %v1768_v57, %v1768_v57  ;;  %vm354_vm2 = vcmp.eq.f32.partialorder %v353_v46, 8.507059e+37 }
 0x240   :  { %v1472_v10 = vpop.eup %1471  ;;  %v432_v13 = vmul.f32 1.442695, %v428_v2  ;;  %v362_v50 = vmul.f32 %v1766_v56, %v361_v36  ;;  %v414_v2 = vmax.f32 %v1740_v29, 0.0 }
 0x241   :  { %v1474_v24 = vpop.eup %1473  ;;  %v467_v30 = vadd.f32 1.0, %v1472_v10  ;;  %v470_v35 = vmul.f32 -0.5, %v1472_v10  ;;  %v473_v3 = vand.u32 2147483647, %v1472_v10 }
 0x242   :  { %v460_v32 = vmul.f32 0.6931472, %v1474_v24  ;;  %1477 = vpow2.f32 %v432_v13  ;;  %v393_v13 = vadd.f32 %v1762_v52, %v392_v51  ;;  %v455_v24 = vand.u32 2147483647, %v1764_v55 }
 0x243   :  { %1479 = vlog2.f32 %v467_v30  ;;  %v471_v63 = vadd.f32 1.0, %v470_v35  ;;  %v1476_v0 = vpop.eup %1475  ;;  %vm474_vm4 = vcmp.lt.f32.partialorder %v473_v3, 0.0004427343  ;;  %v382_v51 = vsel %vm1819_vm3, %v1758_v48, %v378_v7 }
 0x244   :  { %v466_v62 = vsel %vm1789_vm11, %v463_v49, %v460_v32  ;;  %v451_v32 = vmul.f32 0.6931472, %v1476_v0  ;;  %v415_v49 = vmax.f32 %v1752_v42, 0.0  ;;  %v397_v61 = vsel %vm1831_vm6, %v1762_v52, %v393_v13 }
 0x245   :  { %v478_v25 = vadd.f32 %v466_v62, %v414_v2  ;;  %v472_v36 = vmul.f32 %v1472_v10, %v471_v63  ;;  %vm1841_vm10 = vcmp.lt.f32.partialorder %v455_v24, 0.0004427343  ;;  %v401_v63 = vor.u32 1.1754944e-38, %v400_v14 }
 0x246   :  { %v457_v0 = vsel %vm1841_vm10, %v454_v33, %v451_v32  ;;  %vm419_vm11 = vcmp.ne.f32.partialorder %v1752_v42, %v1752_v42  ;;  %v387_v2 = vsel %vm1793_vm12, %v386_v60, %v382_v51  ;;  %v413_v52 = vmax.f32 %v1735_v15, 0.0 }
 0x247   :  { %v482_v38 = vsel %vm418_vm7, %v1740_v29, %v478_v25  ;;  %v402_v7 = vsel %vm1810_vm1, %v401_v63, %v397_v61  ;;  %v363_v14 = vadd.f32 %v1766_v56, %v362_v50  ;;  %v355_v25 = vand.u32 2147483648, %v1738_v26 }
 0x248   :  { %v1478_v8 = vpop.eup %1477  ;;  %v486_v12 = vmul.f32 %v482_v38, %v387_v2  ;;  %v477_v24 = vadd.f32 %v457_v0, %v413_v52  ;;  %vm364_vm12 = vweird.f32 %v1748_v41  ;;  %v368_v50 = vand.u32 2147483647, %v1748_v41 }
 0x249   :  { %v1480_v17 = vpop.eup %1479  ;;  %v440_v30 = vadd.f32 1.0, %v1478_v8  ;;  %v443_v39 = vmul.f32 -0.5, %v1478_v8  ;;  %v446_v3 = vand.u32 2147483647, %v1478_v8  ;;  %v412_v32 = vmax.f32 %v1768_v57, 0.0  ;;  %vm366_vm1 = vmor %vm364_vm12, %vm365_vm13 }
 0x24a   :  { %v469_v35 = vmul.f32 0.6931472, %v1480_v17  ;;  %vm417_vm3 = vcmp.ne.f32.partialorder %v1735_v15, %v1735_v15  ;;  %v356_v47 = vor.u32 1.1754944e-38, %v355_v25  ;;  %vm490_vm6 = vcmask 261120  }
 0x24b   :  { %1481 = vlog2.f32 %v440_v30  ;;  %v444_v55 = vadd.f32 1.0, %v443_v39  ;;  %vm447_vm0 = vcmp.lt.f32.partialorder %v446_v3, 0.0004427343  ;;  %v481_v41 = vsel %vm417_vm3, %v1735_v15, %v477_v24 }
 0x24c   :  { %v475_v54 = vsel %vm474_vm4, %v472_v36, %v469_v35  ;;  %v367_v36 = vsel %vm366_vm1, %v1766_v56, %v363_v14  ;;  %vm369_vm4 = vcmp.eq.f32.partialorder %v368_v50, 8.507059e+37  ;;  %v1573_v15 = vmov 12.0  }
 0x24d   :  { %v479_v62 = vadd.f32 %v475_v54, %v415_v49  ;;  %v445_v30 = vmul.f32 %v1478_v8, %v444_v55  ;;  %v352_v8 = vsel %vm1865_vm14, %v1754_v43, %v1783_v40  ;;  %v371_v49 = vor.u32 1.1754944e-38, %v370_v59 }
 0x24e   :  { %v357_v51 = vsel %vm354_vm2, %v356_v47, %v352_v8  ;;  %1483 = vrcp.f32 %v1573_v15  ;;  %vm509_vm7 = vcmask 519168  }
 0x24f   :  { %v483_v29 = vsel %vm419_vm11, %v1752_v42, %v479_v62  ;;  %v372_v10 = vsel %vm369_vm4, %v371_v49, %v367_v36  ;;  %v1905_v49 = vld [vmem:[%s2353_s3 + $0x2] ss:$0 sm:$0xff] }
 0x250   :  { %v487_v13 = vmul.f32 %v483_v29, %v402_v7  ;;  %v485_v43 = vmul.f32 %v481_v41, %v372_v10 }
 0x251   :  { %v1482_v17 = vpop.eup %1481 }
 0x252   :  { %v442_v60 = vmul.f32 0.6931472, %v1482_v17  ;;  %v489_v31 = vpack.c.bf16 %v487_v13, %v486_v12 }
 0x254   :  { %v448_v35 = vsel %vm447_vm0, %v445_v30, %v442_v60  ;;  %500 = vmatpush.bf16.msrb.mxu3 %v489_v31  ;;  %v1484_v26 = vpop.eup %1483 }
 0x255   :  { %v476_v39 = vadd.f32 %v448_v35, %v412_v32  ;;  %v519_v56 = vmul.f32 12.0, %v1484_v26  ;;  %vm523_vm10 = vweird.f32 %v1484_v26 }
 0x257   :  { %v480_v33 = vsel %vm416_vm15, %v1768_v57, %v476_v39  ;;  %v520_v46 = vsub.f32 1.0, %v519_v56 }
 0x258   :  { %v484_v54 = vmul.f32 %v480_v33, %v357_v51  ;;  %v1910_v33 = vld [vmem:[%s2353_s3 + $0x3] ss:$0 sm:$0xff] }
 0x259   :  { %v521_v38 = vmul.f32 %v1484_v26, %v520_v46 }
 0x25a   :  { %v488_v40 = vpack.c.bf16 %v485_v43, %v484_v54 }
 0x25b   :  { %v522_v2 = vadd.f32 %v1484_v26, %v521_v38 }
 0x25c   :  { %501 = vmatpush.bf16.msrb.mxu3 %v488_v40 }
 0x25d   :  { %v1898_v12 = vsel %vm523_vm10, %v1484_v26, %v522_v2 }
 0x25f   :  { %1374 = vmatmul.msk.bf16.vlgmr.msrb.gmra.mxu3 %vm490_vm6, %v1635_v16 }
 0x260   :  { %586 = vmatpush.bf16.msra.mxu3 %v1624_v9 }
 0x264   :  { %587 = vmatpush.bf16.msra.mxu3 %v1646_v19 }
 0x268   :  { %588 = vmatpush.bf16.msra.mxu3 %v1658_v21 }
 0x26c   :  { %589 = vmatpush.bf16.msra.mxu3 %v1670_v23 }
 0x270   :  { %876 = vmatpush.bf16.msrb.mxu3 %v1613_v6 }
 0x274   :  { %877 = vmatpush.bf16.msrb.mxu3 %v1641_v18 }
 0x278   :  { %878 = vmatpush.bf16.msrb.mxu3 %v1653_v20 }
 0x27c   :  { %879 = vmatpush.bf16.msrb.mxu3 %v1665_v22 }
 0x2e2   :  { %v503_v9 = vpop.f32.mrf.mxu3 }
 0x2e3   :  { %v526_v57 = vmul.f32 %v503_v9, %v503_v9  ;;  %v508_v21 = vsel %vm176_vm5, %v503_v9, 0.0 }
 0x2e5   :  { %v528_v18 = vsel %vm176_vm5, %v526_v57, 0.0 }
 0x2ea   :  { %v505_v19 = vpop.f32.mrf.mxu3 }
 0x2eb   :  { %v510_v23 = vsel %vm509_vm7, %v505_v19, 0.0  ;;  %v527_v6 = vmul.f32 %v505_v19, %v505_v19 }
 0x2ec   :  { %v511_v61 = vadd.f32 %v510_v23, %v508_v21 }
 0x2ed   :  { %v529_v20 = vsel %vm509_vm7, %v527_v6, 0.0 }
 0x2ee   :  { %v512_v22 = vrot.slane %v511_v61, 4  ;;  %v530_v48 = vadd.f32 %v529_v20, %v528_v18 }
 0x2f0   :  { %v513_v62 = vadd.f32 %v512_v22, %v511_v61  ;;  %v531_v63 = vrot.slane %v530_v48, 4 }
 0x2f2   :  { %v514_v0 = vrot.slane %v513_v62, 2  ;;  %v532_v55 = vadd.f32 %v531_v63, %v530_v48 }
 0x2f4   :  { %v515_v52 = vadd.f32 %v514_v0, %v513_v62  ;;  %v533_v3 = vrot.slane %v532_v55, 2 }
 0x2f6   :  { %v516_v7 = vrot.slane %v515_v52, 1  ;;  %v534_v29 = vadd.f32 %v533_v3, %v532_v55 }
 0x2f8   :  { %v517_v13 = vadd.f32 %v516_v7, %v515_v52  ;;  %v535_v14 = vrot.slane %v534_v29, 1 }
 0x2fa   :  { %v525_v17 = vmul.f32 %v1898_v12, %v517_v13  ;;  %v536_v24 = vadd.f32 %v535_v14, %v534_v29 }
 0x2fc   :  { %v537_v25 = vmul.f32 %v536_v24, %v1898_v12  ;;  %v538_v59 = vmul.f32 %v525_v17, %v525_v17  ;;  %v541_v39 = vsub.f32 %v503_v9, %v525_v17  ;;  %v542_v47 = vsub.f32 %v505_v19, %v525_v17 }
 0x2fe   :  { %v539_v60 = vsub.f32 %v537_v25, %v538_v59 }
 0x300   :  { %v540_v30 = vmax.f32 %v539_v60, 0.0 }
 0x302   :  { %v543_v31 = vadd.f32 1e-05, %v540_v30 }
 0x304   :  { %1485 = vrsqrt.f32 %v543_v31  ;;  %vm550_vm13 = vweird.f32 %v543_v31 }
 0x30a   :  { %v1486_v42 = vpop.eup %1485 }
 0x30b   :  { %v545_v50 = vmul.f32 %v1486_v42, %v543_v31  ;;  %vm551_vm11 = vweird.f32 %v1486_v42 }
 0x30c   :  { %vm552_vm12 = vmor %vm550_vm13, %vm551_vm11 }
 0x30d   :  { %v546_v32 = vmul.f32 %v1486_v42, %v545_v50 }
 0x30f   :  { %v547_v35 = vmul.f32 0.5, %v546_v32 }
 0x311   :  { %v548_v8 = vsub.f32 1.5, %v547_v35 }
 0x313   :  { %v549_v36 = vmul.f32 %v1486_v42, %v548_v8 }
 0x315   :  { %v553_v41 = vsel %vm552_vm12, %v1486_v42, %v549_v36 }
 0x316   :  { %v554_v51 = vmul.f32 %v553_v41, %v541_v39  ;;  %v555_v10 = vmul.f32 %v553_v41, %v542_v47 }
 0x318   :  { %v557_v54 = vmul.f32 %v1905_v49, %v554_v51  ;;  %v558_v43 = vmul.f32 %v1905_v49, %v555_v10 }
 0x31a   :  { %v561_v40 = vadd.f32 %v1910_v33, %v558_v43  ;;  %v560_v15 = vadd.f32 %v1910_v33, %v557_v54 }
 0x31c   :  { %v1917_v9 = vadd.f32 %v560_v15, %v1677_v27  ;;  %v1920_v26 = vadd.f32 %v561_v40, %v1679_v28 }
 0x31e   :  { %v564_v56 = vpack.c.bf16 %v1920_v26, %v1917_v9 }
 0x320   :  { %1375 = vmatmul.msk.bf16.vlgmr.msrb.gmra.mxu1 %vm176_vm5, %v564_v56  ;;  %1376 = vmatmul.msk.bf16.vlgmr.msra.gmra.mxu3 %vm176_vm5, %v564_v56 }
 0x39d   :  { %v577_v57 = vpop.f32.mrf.mxu1 }
 0x3a3   :  { %v591_v19 = vpop.f32.mrf.mxu3 }
 0x3a5   :  { %v579_v21 = vpop.f32.mrf.mxu1 }
 0x3a6   :  { %v596_v23 = vpack.c.bf16 %v579_v21, %v577_v57 }
 0x3a8   :  { %v621_v46 = vsel %vm257_vm8, %v596_v23, 0 }
 0x3a9   :  { %630 = vmatpush.bf16.msra.mxu1 %v621_v46 }
 0x3ab   :  { %v593_v6 = vpop.f32.mrf.mxu3 }
 0x3ac   :  { %v597_v27 = vpack.c.bf16 %v593_v6, %v591_v19  ;;  %1379 = vmatmul.msk.bf16.vlgmr.msra.gmra.mxu1 %vm250_vm9, %v1698_v34 }
 0x3ae   :  { %v599_v28 = vsel %vm257_vm8, %v597_v27, 0 }
 0x3af   :  { %608 = vmatpush.bf16.msra.mxu0 %v599_v28 }
 0x3b2   :  { %1377 = vmatmul.msk.bf16.vlgmr.msra.gmra.mxu0 %vm250_vm9, %v1700_v37 }
 0x3bc   :  { %1380 = vmatmul.msk.bf16.gmra.mxu1 %vm250_vm9, %v1708_v44 }
 0x3c2   :  { %1378 = vmatmul.msk.bf16.gmra.mxu0 %vm250_vm9, %v1710_v45 }
 0x429   :  { %v632_v61 = vpop.f32.mrf.mxu1 }
 0x42f   :  { %v610_v18 = vpop.f32.mrf.mxu0 }
 0x430   :  { %v633_v0 = vadd.f32 %v632_v61, %v610_v18 }
 0x431   :  { %v634_v20 = vpop.f32.mrf.mxu1 }
 0x432   :  { %v642_v3 = vadd.f32 %v633_v0, %v1731_v4 }
 0x434   :  { %v1381_v17 = vmul.f32 -1.442695, %v642_v3 }
 0x436   :  { %1487 = vpow2.f32 %v1381_v17 }
 0x437   :  { %v612_v22 = vpop.f32.mrf.mxu0 }
 0x438   :  { %v635_v29 = vadd.f32 %v634_v20, %v612_v22 }
 0x439   :  { %v637_v48 = vpop.f32.mrf.mxu1 }
 0x43a   :  { %v643_v13 = vadd.f32 %v635_v29, %v1719_v53 }
 0x43c   :  { %v1382_v60 = vmul.f32 -1.442695, %v643_v13  ;;  %v1488_v42 = vpop.eup %1487 }
 0x43d   :  { %v1950_v35 = vadd.f32 1.0, %v1488_v42 }
 0x43f   :  { %v615_v38 = vpop.f32.mrf.mxu0  ;;  %vm667_vm11 = vweird.f32 %v1950_v35 }
 0x440   :  { %v638_v62 = vadd.f32 %v637_v48, %v615_v38 }
 0x441   :  { %v639_v55 = vpop.f32.mrf.mxu1 }
 0x442   :  { %v644_v63 = vadd.f32 %v638_v62, %v1723_v58 }
 0x444   :  { %726 = vrot.lane.b32.xlu2 %v644_v63, %s1572_s24  ;;  %v1383_v25 = vmul.f32 -1.442695, %v644_v63 }
 0x446   :  { %1489 = vpow2.f32 %v1383_v25 }
 0x447   :  { %v617_v2 = vpop.f32.mrf.mxu0 }
 0x448   :  { %v640_v52 = vadd.f32 %v639_v55, %v617_v2 }
 0x44a   :  { %v645_v7 = vadd.f32 %v640_v52, %v1727_v1 }
 0x44c   :  { %728 = vrot.lane.b32.xlu1 %v645_v7, %s1572_s24  ;;  %722 = vrot.lane.b32.xlu2 %v642_v3, %s1572_s24  ;;  %v1384_v59 = vmul.f32 -1.442695, %v645_v7  ;;  %v1490_v8 = vpop.eup %1489 }
 0x44d   :  { %v1953_v41 = vadd.f32 1.0, %v1490_v8  ;;  %v671_v8 = vand.u32 2147483647, %v1950_v35 }
 0x44e   :  { %1491 = vpow2.f32 %v1384_v59 }
 0x44f   :  { %1493 = vpow2.f32 %v1382_v60  ;;  %v701_v7 = vand.u32 2147483647, %v1953_v41  ;;  %vm697_vm14 = vweird.f32 %v1953_v41 }
 0x451   :  { %vm1998_vm0 = vcmp.eq.f32.partialorder %v701_v7, 8.507059e+37 }
 0x454   :  { %724 = vrot.lane.b32.xlu1 %v643_v13, %s1572_s24  ;;  %v1492_v36 = vpop.eup %1491 }
 0x455   :  { %v1494_v47 = vpop.eup %1493  ;;  %v1955_v51 = vadd.f32 1.0, %v1492_v36 }
 0x456   :  { %v1957_v54 = vadd.f32 1.0, %v1494_v47 }
 0x457   :  { %vm712_vm15 = vweird.f32 %v1955_v51 }
 0x49e   :  { %v1944_v14 = vpop.permute.xlu2 %726 }
 0x49f   :  { %v744_v24 = vand.u32 2147483647, %v1944_v14 }
 0x4a1   :  { %v748_v30 = vsub.f32 0.0, %v744_v24  ;;  %v703_v24 = vand.u32 2147483648, %v1953_v41 }
 0x4a3   :  { %v754_v50 = vmul.f32 1.442695, %v748_v30 }
 0x4a5   :  { %1495 = vpow2.f32 %v754_v50 }
 0x4a6   :  { %v1947_v31 = vpop.permute.xlu2 %722  ;;  %1497 = vrcp.f32 %v1950_v35 }
 0x4a7   :  { %v742_v32 = vand.u32 2147483647, %v1947_v31  ;;  %1499 = vrcp.f32 %v1953_v41 }
 0x4a8   :  { %1501 = vrcp.f32 %v1955_v51 }
 0x4a9   :  { %v746_v39 = vsub.f32 0.0, %v742_v32 }
 0x4ab   :  { %v750_v10 = vmul.f32 1.442695, %v746_v39  ;;  %v1496_v43 = vpop.eup %1495 }
 0x4ac   :  { %v1963_v15 = vpop.eup %1497  ;;  %v776_v57 = vadd.f32 1.0, %v1496_v43  ;;  %v779_v22 = vmul.f32 -0.5, %v1496_v43  ;;  %v782_v25 = vand.u32 2147483647, %v1496_v43 }
 0x4ad   :  { %1503 = vpow2.f32 %v750_v10  ;;  %v663_v21 = vmul.f32 %v1963_v15, %v1950_v35  ;;  %v1969_v23 = vpop.eup %1499  ;;  %vm668_vm2 = vweird.f32 %v1963_v15 }
 0x4ae   :  { %1505 = vrcp.f32 %v1957_v54  ;;  %v1971_v6 = vpop.eup %1501  ;;  %v693_v61 = vmul.f32 %v1969_v23, %v1953_v41  ;;  %v780_v29 = vadd.f32 1.0, %v779_v22  ;;  %vm2002_vm1 = vcmp.lt.f32.partialorder %v782_v25, 0.0004427343 }
 0x4af   :  { %1507 = vlog2.f32 %v776_v57  ;;  %v664_v20 = vsub.f32 1.0, %v663_v21  ;;  %v708_v48 = vmul.f32 %v1971_v6, %v1955_v51  ;;  %vm698_vm3 = vweird.f32 %v1969_v23 }
 0x4b0   :  { %v694_v2 = vsub.f32 1.0, %v693_v61  ;;  %v781_v36 = vmul.f32 %v1496_v43, %v780_v29  ;;  %v732_v22 = vmax.f32 %v1944_v14, 0.0  ;;  %vm713_vm4 = vweird.f32 %v1971_v6  ;;  %vm2028_vm13 = vmor %vm697_vm14, %vm698_vm3 }
 0x4b1   :  { %v665_v52 = vmul.f32 %v1963_v15, %v664_v20  ;;  %v709_v13 = vsub.f32 1.0, %v708_v48  ;;  %vm2037_vm12 = vmor %vm712_vm15, %vm713_vm4  ;;  %vm682_vm4 = vweird.f32 %v1957_v54 }
 0x4b2   :  { %v695_v50 = vmul.f32 %v1969_v23, %v694_v2 }
 0x4b3   :  { %v1973_v27 = vpop.eup %1503  ;;  %v1992_v32 = vadd.f32 %v1963_v15, %v665_v52  ;;  %v710_v47 = vmul.f32 %v1971_v6, %v709_v13 }
 0x4b4   :  { %v1975_v28 = vpop.eup %1505  ;;  %v758_v62 = vadd.f32 1.0, %v1973_v27  ;;  %v761_v39 = vmul.f32 -0.5, %v1973_v27  ;;  %v696_v20 = vadd.f32 %v1969_v23, %v695_v50  ;;  %v764_v52 = vand.u32 2147483647, %v1973_v27 }
 0x4b5   :  { %v678_v0 = vmul.f32 %v1975_v28, %v1957_v54  ;;  %v1508_v55 = vpop.eup %1507 }
 0x4b6   :  { %v778_v60 = vmul.f32 0.6931472, %v1508_v55  ;;  %vm2049_vm3 = vcmp.lt.f32.partialorder %v764_v52, 0.0004427343 }
 0x4b7   :  { %v679_v42 = vsub.f32 1.0, %v678_v0  ;;  %v718_v0 = vand.u32 2147483648, %v1955_v51 }
 0x4b8   :  { %v784_v43 = vsel %vm2002_vm1, %v781_v36, %v778_v60  ;;  %v700_v60 = vsel %vm2028_vm13, %v1969_v23, %v696_v20  ;;  %vm736_vm1 = vcmp.ne.f32.partialorder %v1944_v14, %v1944_v14 }
 0x4b9   :  { %v796_v2 = vadd.f32 %v784_v43, %v732_v22  ;;  %v719_v36 = vor.u32 1.1754944e-38, %v718_v0  ;;  %v673_v22 = vand.u32 2147483648, %v1950_v35  ;;  %v1566_v35 = vld [vmem:[%s2350_s2 + $0x38] sm:$0xff] }
 0x4bb   :  { %v674_v13 = vor.u32 1.1754944e-38, %v673_v22 }
 0x4be   :  { %v1961_v40 = vpop.permute.xlu1 %728 }
 0x4bf   :  { %v745_v56 = vand.u32 2147483647, %v1961_v40  ;;  %v733_v41 = vmax.f32 %v1961_v40, 0.0  ;;  %vm737_vm15 = vcmp.ne.f32.partialorder %v1961_v40, %v1961_v40 }
 0x4c1   :  { %v749_v19 = vsub.f32 0.0, %v745_v56  ;;  %v704_v56 = vor.u32 1.1754944e-38, %v703_v24 }
 0x4c3   :  { %v756_v46 = vmul.f32 1.442695, %v749_v19  ;;  %v716_v19 = vand.u32 2147483647, %v1955_v51  ;;  %v800_v51 = vsel %vm736_vm1, %v1944_v14, %v796_v2 }
 0x4c5   :  { %1509 = vpow2.f32 %v756_v46  ;;  %v680_v46 = vmul.f32 %v1975_v28, %v679_v42  ;;  %vm2019_vm10 = vcmp.eq.f32.partialorder %v716_v19, 8.507059e+37 }
 0x4c6   :  { %v1979_v18 = vpop.permute.xlu1 %724  ;;  %1511 = vlog2.f32 %v758_v62  ;;  %v762_v62 = vadd.f32 1.0, %v761_v39 }
 0x4c7   :  { %v743_v38 = vand.u32 2147483647, %v1979_v18  ;;  %v681_v10 = vadd.f32 %v1975_v28, %v680_v46  ;;  %v686_v46 = vand.u32 2147483647, %v1957_v54 }
 0x4c9   :  { %v747_v63 = vsub.f32 0.0, %v743_v38  ;;  %vm687_vm1 = vcmp.eq.f32.partialorder %v686_v46, 8.507059e+37 }
 0x4cb   :  { %v1510_v3 = vpop.eup %1509  ;;  %v752_v17 = vmul.f32 1.442695, %v747_v63  ;;  %v711_v63 = vadd.f32 %v1971_v6, %v710_v47  ;;  %v705_v47 = vsel %vm1998_vm0, %v704_v56, %v700_v60  ;;  %vm683_vm0 = vweird.f32 %v1975_v28 }
 0x4cc   :  { %v785_v59 = vadd.f32 1.0, %v1510_v3  ;;  %v788_v30 = vmul.f32 -0.5, %v1510_v3  ;;  %v1512_v61 = vpop.eup %1511  ;;  %v791_v48 = vand.u32 2147483647, %v1510_v3 }
 0x4cd   :  { %1513 = vpow2.f32 %v752_v17  ;;  %v760_v17 = vmul.f32 0.6931472, %v1512_v61  ;;  %v715_v42 = vsel %vm2037_vm12, %v1971_v6, %v711_v63  ;;  %v730_v6 = vmax.f32 %v1947_v31, 0.0  ;;  %vm2078_vm12 = vmor %vm682_vm4, %vm683_vm0 }
 0x4ce   :  { %1515 = vlog2.f32 %v785_v59  ;;  %v789_v21 = vadd.f32 1.0, %v788_v30  ;;  %vm792_vm14 = vcmp.lt.f32.partialorder %v791_v48, 0.0004427343  ;;  %v720_v14 = vsel %vm2019_vm10, %v719_v36, %v715_v42  ;;  %vm2072_vm10 = vmor %vm667_vm11, %vm668_vm2 }
 0x4cf   :  { %v688_v48 = vand.u32 2147483648, %v1957_v54  ;;  %v670_v52 = vsel %vm2072_vm10, %v1963_v15, %v1992_v32  ;;  %v685_v54 = vsel %vm2078_vm12, %v1975_v28, %v681_v10  ;;  %vm735_vm2 = vcmp.ne.f32.partialorder %v1979_v18, %v1979_v18  ;;  %v1567_v28 = vld [vmem:[%s2350_s2 + $0x30] sm:$0xff] }
 0x4d0   :  { %v790_v25 = vmul.f32 %v1510_v3, %v789_v21  ;;  %v763_v3 = vmul.f32 %v1973_v27, %v762_v62  ;;  %v804_v21 = vmul.f32 %v800_v51, %v705_v47  ;;  %vm672_vm11 = vcmp.eq.f32.partialorder %v671_v8, 8.507059e+37 }
 0x4d2   :  { %v766_v57 = vsel %vm2049_vm3, %v763_v3, %v760_v17  ;;  %v689_v17 = vor.u32 1.1754944e-38, %v688_v48 }
 0x4d3   :  { %v1514_v38 = vpop.eup %1513  ;;  %v794_v20 = vadd.f32 %v766_v57, %v730_v6 }
 0x4d4   :  { %v1516_v55 = vpop.eup %1515  ;;  %v767_v29 = vadd.f32 1.0, %v1514_v38  ;;  %v770_v59 = vmul.f32 -0.5, %v1514_v38  ;;  %v773_v43 = vand.u32 2147483647, %v1514_v38  ;;  %v690_v15 = vsel %vm687_vm1, %v689_v17, %v685_v54 }
 0x4d5   :  { %v787_v24 = vmul.f32 0.6931472, %v1516_v55  ;;  %v731_v55 = vmax.f32 %v1979_v18, 0.0 }
 0x4d6   :  { %1517 = vlog2.f32 %v767_v29  ;;  %v771_v27 = vadd.f32 1.0, %v770_v59  ;;  %vm774_vm13 = vcmp.lt.f32.partialorder %v773_v43, 0.0004427343 }
 0x4d7   :  { %v793_v23 = vsel %vm792_vm14, %v790_v25, %v787_v24  ;;  %vm734_vm14 = vcmp.ne.f32.partialorder %v1947_v31, %v1947_v31  ;;  %v675_v25 = vsel %vm672_vm11, %v674_v13, %v670_v52 }
 0x4d8   :  { %v797_v39 = vadd.f32 %v793_v23, %v733_v41  ;;  %v772_v63 = vmul.f32 %v1514_v38, %v771_v27  ;;  %v798_v7 = vsel %vm734_vm14, %v1947_v31, %v794_v20  ;;  %v1565_v31 = vld [vmem:[%s2350_s2 + $0x40] sm:$0xff] }
 0x4d9   :  { %v802_v32 = vmul.f32 %v798_v7, %v675_v25 }
 0x4da   :  { %v801_v19 = vsel %vm737_vm15, %v1961_v40, %v797_v39 }
 0x4db   :  { %v805_v61 = vmul.f32 %v801_v19, %v720_v14 }
 0x4dc   :  { %v1518_v56 = vpop.eup %1517 }
 0x4dd   :  { %v769_v62 = vmul.f32 0.6931472, %v1518_v56  ;;  %v807_v0 = vpack.c.bf16 %v805_v61, %v804_v21 }
 0x4df   :  { %v775_v38 = vsel %vm774_vm13, %v772_v63, %v769_v62  ;;  %814 = vmatpush.bf16.msra.mxu2 %v807_v0 }
 0x4e0   :  { %v795_v29 = vadd.f32 %v775_v38, %v731_v55 }
 0x4e2   :  { %v799_v24 = vsel %vm735_vm2, %v1979_v18, %v795_v29  ;;  %v1568_v18 = vld [vmem:[%s2350_s2 + $0x28] sm:$0xff] }
 0x4e3   :  { %v803_v59 = vmul.f32 %v799_v24, %v690_v15 }
 0x4e5   :  { %v806_v60 = vpack.c.bf16 %v803_v59, %v802_v32 }
 0x4e7   :  { %815 = vmatpush.bf16.msra.mxu2 %v806_v60 }
 0x4ea   :  { %1385 = vmatmul.msk.bf16.vlgmr.msra.gmra.mxu2 %vm490_vm6, %v1635_v16 }
 0x4eb   :  { %890 = vmatpush.bf16.msrb.mxu2 %v1565_v31 }
 0x4ef   :  { %891 = vmatpush.bf16.msrb.mxu2 %v1566_v35 }
 0x4f3   :  { %892 = vmatpush.bf16.msrb.mxu2 %v1567_v28 }
 0x4f7   :  { %893 = vmatpush.bf16.msrb.mxu2 %v1568_v18 }
 0x56d   :  { %v817_v8 = vpop.f32.mrf.mxu2 }
 0x56e   :  { %v832_v30 = vmul.f32 %v817_v8, %v817_v8  ;;  %v822_v3 = vsel %vm176_vm5, %v817_v8, 0.0 }
 0x570   :  { %v834_v50 = vsel %vm176_vm5, %v832_v30, 0.0 }
 0x575   :  { %v819_v41 = vpop.f32.mrf.mxu2 }
 0x576   :  { %v823_v42 = vsel %vm509_vm7, %v819_v41, 0.0  ;;  %v833_v23 = vmul.f32 %v819_v41, %v819_v41 }
 0x577   :  { %v824_v51 = vadd.f32 %v823_v42, %v822_v3 }
 0x578   :  { %v835_v36 = vsel %vm509_vm7, %v833_v23, 0.0 }
 0x579   :  { %v825_v39 = vrot.slane %v824_v51, 4  ;;  %v836_v47 = vadd.f32 %v835_v36, %v834_v50 }
 0x57b   :  { %v826_v57 = vadd.f32 %v825_v39, %v824_v51  ;;  %v837_v27 = vrot.slane %v836_v47, 4 }
 0x57d   :  { %v827_v6 = vrot.slane %v826_v57, 2  ;;  %v838_v14 = vadd.f32 %v837_v27, %v836_v47 }
 0x57f   :  { %v828_v19 = vadd.f32 %v827_v6, %v826_v57  ;;  %v839_v43 = vrot.slane %v838_v14, 2 }
 0x581   :  { %v829_v21 = vrot.slane %v828_v19, 1  ;;  %v840_v61 = vadd.f32 %v839_v43, %v838_v14 }
 0x583   :  { %v830_v10 = vadd.f32 %v829_v21, %v828_v19  ;;  %v841_v56 = vrot.slane %v840_v61, 1 }
 0x585   :  { %v831_v20 = vmul.f32 %v830_v10, %v1898_v12  ;;  %v842_v22 = vadd.f32 %v841_v56, %v840_v61 }
 0x587   :  { %v843_v48 = vmul.f32 %v842_v22, %v1898_v12  ;;  %v844_v62 = vmul.f32 %v831_v20, %v831_v20  ;;  %v847_v7 = vsub.f32 %v817_v8, %v831_v20  ;;  %v848_v29 = vsub.f32 %v819_v41, %v831_v20 }
 0x589   :  { %v845_v63 = vsub.f32 %v843_v48, %v844_v62 }
 0x58b   :  { %v846_v0 = vmax.f32 %v845_v63, 0.0 }
 0x58d   :  { %v849_v40 = vadd.f32 1e-05, %v846_v0 }
 0x58f   :  { %1519 = vrsqrt.f32 %v849_v40  ;;  %vm856_vm15 = vweird.f32 %v849_v40 }
 0x595   :  { %v1520_v46 = vpop.eup %1519 }
 0x596   :  { %v851_v55 = vmul.f32 %v1520_v46, %v849_v40  ;;  %vm857_vm3 = vweird.f32 %v1520_v46 }
 0x597   :  { %vm858_vm0 = vmor %vm856_vm15, %vm857_vm3 }
 0x598   :  { %v852_v2 = vmul.f32 %v1520_v46, %v851_v55 }
 0x59a   :  { %v853_v38 = vmul.f32 0.5, %v852_v2 }
 0x59c   :  { %v854_v52 = vsub.f32 1.5, %v853_v38 }
 0x59e   :  { %v855_v54 = vmul.f32 %v1520_v46, %v854_v52 }
 0x5a0   :  { %v859_v13 = vsel %vm858_vm0, %v1520_v46, %v855_v54 }
 0x5a1   :  { %v860_v17 = vmul.f32 %v859_v13, %v847_v7  ;;  %v861_v24 = vmul.f32 %v859_v13, %v848_v29 }
 0x5a3   :  { %v862_v25 = vmul.f32 %v1905_v49, %v860_v17  ;;  %v863_v15 = vmul.f32 %v1905_v49, %v861_v24 }
 0x5a5   :  { %v864_v32 = vadd.f32 %v1910_v33, %v862_v25  ;;  %v865_v59 = vadd.f32 %v1910_v33, %v863_v15 }
 0x5a7   :  { %v2122_v60 = vadd.f32 %v864_v32, %v1917_v9  ;;  %v2125_v31 = vadd.f32 %v865_v59, %v1920_v26 }
 0x5a9   :  { %v868_v35 = vpack.c.bf16 %v2125_v31, %v2122_v60 }
 0x5ab   :  { %1386 = vmatmul.msk.bf16.vlgmr.msrb.gmra.mxu3 %vm176_vm5, %v868_v35  ;;  %1387 = vmatmul.msk.bf16.vlgmr.msrb.gmra.mxu2 %vm176_vm5, %v868_v35 }
 0x62e   :  { %v881_v28 = vpop.f32.mrf.mxu3  ;;  %v895_v18 = vpop.f32.mrf.mxu2 }
 0x636   :  { %v883_v49 = vpop.f32.mrf.mxu3  ;;  %v897_v8 = vpop.f32.mrf.mxu2 }
 0x637   :  { %v900_v30 = vpack.c.bf16 %v883_v49, %v881_v28  ;;  %v901_v41 = vpack.c.bf16 %v897_v8, %v895_v18 }
 0x639   :  { %v925_v33 = vsel %vm257_vm8, %v900_v30, 0  ;;  %v903_v9 = vsel %vm257_vm8, %v901_v41, 0 }
 0x63a   :  { %912 = vmatpush.bf16.msra.mxu3 %v903_v9  ;;  %934 = vmatpush.bf16.msrb.mxu0 %v925_v33 }
 0x63d   :  { %1388 = vmatmul.msk.bf16.vlgmr.msra.gmra.mxu3 %vm250_vm9, %v1700_v37  ;;  %1390 = vmatmul.msk.bf16.vlgmr.msrb.gmra.mxu0 %vm250_vm9, %v1698_v34 }
 0x64d   :  { %1389 = vmatmul.msk.bf16.gmra.mxu3 %vm250_vm9, %v1710_v45  ;;  %1391 = vmatmul.msk.bf16.gmra.mxu0 %vm250_vm9, %v1708_v44 }
 0x6ba   :  { %v936_v26 = vpop.f32.mrf.mxu0 }
 0x6c0   :  { %v914_v3 = vpop.f32.mrf.mxu3 }
 0x6c1   :  { %v937_v37 = vadd.f32 %v936_v26, %v914_v3 }
 0x6c2   :  { %v938_v42 = vpop.f32.mrf.mxu0 }
 0x6c3   :  { %v946_v45 = vadd.f32 %v937_v37, %v1731_v4 }
 0x6c5   :  { %v1392_v14 = vmul.f32 -1.442695, %v946_v45 }
 0x6c7   :  { %1521 = vpow2.f32 %v1392_v14 }
 0x6c8   :  { %v916_v23 = vpop.f32.mrf.mxu3 }
 0x6c9   :  { %v939_v44 = vadd.f32 %v938_v42, %v916_v23 }
 0x6ca   :  { %v941_v51 = vpop.f32.mrf.mxu0 }
 0x6cb   :  { %v947_v6 = vadd.f32 %v939_v44, %v1719_v53 }
 0x6cd   :  { %v1393_v4 = vmul.f32 -1.442695, %v947_v6  ;;  %v1522_v10 = vpop.eup %1521 }
 0x6ce   :  { %v2155_v20 = vadd.f32 1.0, %v1522_v10 }
 0x6d0   :  { %v919_v50 = vpop.f32.mrf.mxu3  ;;  %vm971_vm3 = vweird.f32 %v2155_v20 }
 0x6d1   :  { %v942_v36 = vadd.f32 %v941_v51, %v919_v50 }
 0x6d2   :  { %v943_v47 = vpop.f32.mrf.mxu0 }
 0x6d3   :  { %v948_v39 = vadd.f32 %v942_v36, %v1723_v58 }
 0x6d5   :  { %1030 = vrot.lane.b32.xlu2 %v948_v39, %s1572_s24  ;;  %v1394_v43 = vmul.f32 -1.442695, %v948_v39 }
 0x6d7   :  { %1523 = vpow2.f32 %v1394_v43 }
 0x6d8   :  { %v921_v34 = vpop.f32.mrf.mxu3 }
 0x6d9   :  { %v944_v57 = vadd.f32 %v943_v47, %v921_v34 }
 0x6db   :  { %v949_v27 = vadd.f32 %v944_v57, %v1727_v1 }
 0x6dd   :  { %1032 = vrot.lane.b32.xlu1 %v949_v27, %s1572_s24  ;;  %1026 = vrot.lane.b32.xlu2 %v946_v45, %s1572_s24  ;;  %v1395_v21 = vmul.f32 -1.442695, %v949_v27  ;;  %v1524_v22 = vpop.eup %1523 }
 0x6de   :  { %v2158_v0 = vadd.f32 1.0, %v1524_v22 }
 0x6df   :  { %1525 = vpow2.f32 %v1395_v21 }
 0x6e0   :  { %1527 = vpow2.f32 %v1393_v4  ;;  %v1005_v23 = vand.u32 2147483647, %v2158_v0  ;;  %v1007_v39 = vand.u32 2147483648, %v2158_v0  ;;  %vm1001_vm4 = vweird.f32 %v2158_v0 }
 0x6e2   :  { %vm2203_vm10 = vcmp.eq.f32.partialorder %v1005_v23, 8.507059e+37  ;;  %v1008_v4 = vor.u32 1.1754944e-38, %v1007_v39 }
 0x6e5   :  { %1028 = vrot.lane.b32.xlu1 %v947_v6, %s1572_s24  ;;  %v1526_v48 = vpop.eup %1525  ;;  %v975_v6 = vand.u32 2147483647, %v2155_v20 }
 0x6e6   :  { %v1528_v63 = vpop.eup %1527  ;;  %v2160_v40 = vadd.f32 1.0, %v1526_v48 }
 0x6e7   :  { %v2162_v55 = vadd.f32 1.0, %v1528_v63 }
 0x6e8   :  { %v1020_v10 = vand.u32 2147483647, %v2160_v40  ;;  %vm1016_vm14 = vweird.f32 %v2160_v40 }
 0x6ea   :  { %vm2224_vm1 = vcmp.eq.f32.partialorder %v1020_v10, 8.507059e+37  ;;  %v990_v10 = vand.u32 2147483647, %v2162_v55 }
 0x72f   :  { %v2149_v58 = vpop.permute.xlu2 %1030 }
 0x730   :  { %v1048_v19 = vand.u32 2147483647, %v2149_v58  ;;  %v1036_v63 = vmax.f32 %v2149_v58, 0.0 }
 0x732   :  { %v1052_v61 = vsub.f32 0.0, %v1048_v19 }
 0x734   :  { %v1058_v56 = vmul.f32 1.442695, %v1052_v61 }
 0x736   :  { %1529 = vpow2.f32 %v1058_v56 }
 0x737   :  { %v2152_v1 = vpop.permute.xlu2 %1026  ;;  %1531 = vrcp.f32 %v2155_v20 }
 0x738   :  { %v1046_v53 = vand.u32 2147483647, %v2152_v1  ;;  %1533 = vrcp.f32 %v2158_v0 }
 0x739   :  { %1535 = vrcp.f32 %v2160_v40 }
 0x73a   :  { %v1050_v62 = vsub.f32 0.0, %v1046_v53 }
 0x73c   :  { %v1054_v46 = vmul.f32 1.442695, %v1050_v62  ;;  %v1530_v2 = vpop.eup %1529 }
 0x73d   :  { %v2168_v52 = vpop.eup %1531  ;;  %v1080_v7 = vadd.f32 1.0, %v1530_v2  ;;  %v1083_v18 = vmul.f32 -0.5, %v1530_v2  ;;  %v1086_v37 = vand.u32 2147483647, %v1530_v2 }
 0x73e   :  { %1537 = vpow2.f32 %v1054_v46  ;;  %v967_v13 = vmul.f32 %v2168_v52, %v2155_v20  ;;  %v2174_v17 = vpop.eup %1533  ;;  %vm972_vm2 = vweird.f32 %v2168_v52 }
 0x73f   :  { %1539 = vrcp.f32 %v2162_v55  ;;  %v2176_v25 = vpop.eup %1535  ;;  %v997_v59 = vmul.f32 %v2174_v17, %v2158_v0  ;;  %v1084_v51 = vadd.f32 1.0, %v1083_v18  ;;  %vm2207_vm13 = vcmp.lt.f32.partialorder %v1086_v37, 0.0004427343 }
 0x740   :  { %1541 = vlog2.f32 %v1080_v7  ;;  %v968_v28 = vsub.f32 1.0, %v967_v13  ;;  %v1012_v49 = vmul.f32 %v2176_v25, %v2160_v40  ;;  %vm1002_vm12 = vweird.f32 %v2174_v17 }
 0x741   :  { %v998_v26 = vsub.f32 1.0, %v997_v59  ;;  %v1085_v14 = vmul.f32 %v1530_v2, %v1084_v51  ;;  %vm1017_vm11 = vweird.f32 %v2176_v25  ;;  %vm2233_vm15 = vmor %vm1001_vm4, %vm1002_vm12 }
 0x742   :  { %v969_v3 = vmul.f32 %v2168_v52, %v968_v28  ;;  %v1013_v50 = vsub.f32 1.0, %v1012_v49  ;;  %vm2242_vm0 = vmor %vm1016_vm14, %vm1017_vm11  ;;  %vm986_vm11 = vweird.f32 %v2162_v55 }
 0x743   :  { %v999_v27 = vmul.f32 %v2174_v17, %v998_v26 }
 0x744   :  { %v2178_v15 = vpop.eup %1537  ;;  %v2197_v44 = vadd.f32 %v2168_v52, %v969_v3  ;;  %v1014_v43 = vmul.f32 %v2176_v25, %v1013_v50 }
 0x745   :  { %v2180_v32 = vpop.eup %1539  ;;  %v1062_v30 = vadd.f32 1.0, %v2178_v15  ;;  %v1065_v19 = vmul.f32 -0.5, %v2178_v15  ;;  %v1000_v62 = vadd.f32 %v2174_v17, %v999_v27  ;;  %v1068_v59 = vand.u32 2147483647, %v2178_v15 }
 0x746   :  { %v982_v33 = vmul.f32 %v2180_v32, %v2162_v55  ;;  %v1542_v9 = vpop.eup %1541  ;;  %v1015_v7 = vadd.f32 %v2176_v25, %v1014_v43  ;;  %v992_v43 = vand.u32 2147483648, %v2162_v55 }
 0x747   :  { %v1082_v34 = vmul.f32 0.6931472, %v1542_v9  ;;  %v1004_v9 = vsel %vm2233_vm15, %v2174_v17, %v1000_v62  ;;  %vm2254_vm12 = vcmp.lt.f32.partialorder %v1068_v59, 0.0004427343 }
 0x748   :  { %v983_v45 = vsub.f32 1.0, %v982_v33 }
 0x749   :  { %v1088_v56 = vsel %vm2207_vm13, %v1085_v14, %v1082_v34  ;;  %vm1040_vm13 = vcmp.ne.f32.partialorder %v2149_v58, %v2149_v58 }
 0x74a   :  { %v984_v22 = vmul.f32 %v2180_v32, %v983_v45 }
 0x74c   :  { %v985_v45 = vadd.f32 %v2180_v32, %v984_v22 }
 0x74f   :  { %v2166_v38 = vpop.permute.xlu1 %1032 }
 0x750   :  { %v1049_v54 = vand.u32 2147483647, %v2166_v38  ;;  %v1037_v0 = vmax.f32 %v2166_v38, 0.0  ;;  %vm1041_vm14 = vcmp.ne.f32.partialorder %v2166_v38, %v2166_v38 }
 0x752   :  { %v1053_v29 = vsub.f32 0.0, %v1049_v54  ;;  %v1066_v54 = vadd.f32 1.0, %v1065_v19  ;;  %v977_v19 = vand.u32 2147483648, %v2155_v20 }
 0x754   :  { %v1060_v24 = vmul.f32 1.442695, %v1053_v29  ;;  %v1022_v29 = vand.u32 2147483648, %v2160_v40  ;;  %v1067_v3 = vmul.f32 %v2178_v15, %v1066_v54 }
 0x756   :  { %1543 = vpow2.f32 %v1060_v24  ;;  %v1100_v24 = vadd.f32 %v1088_v56, %v1036_v63  ;;  %v1023_v51 = vor.u32 1.1754944e-38, %v1022_v29 }
 0x757   :  { %v2184_v35 = vpop.permute.xlu1 %1028  ;;  %1545 = vlog2.f32 %v1062_v30 }
 0x758   :  { %v1047_v8 = vand.u32 2147483647, %v2184_v35  ;;  %v1104_v40 = vsel %vm1040_vm13, %v2149_v58, %v1100_v24  ;;  %v1035_v56 = vmax.f32 %v2184_v35, 0.0  ;;  %vm991_vm13 = vcmp.eq.f32.partialorder %v990_v10, 8.507059e+37 }
 0x75a   :  { %v1051_v41 = vsub.f32 0.0, %v1047_v8 }
 0x75c   :  { %v1544_v42 = vpop.eup %1543  ;;  %v1056_v36 = vmul.f32 1.442695, %v1051_v41 }
 0x75d   :  { %v1089_v47 = vadd.f32 1.0, %v1544_v42  ;;  %v1092_v57 = vmul.f32 -0.5, %v1544_v42  ;;  %v1546_v48 = vpop.eup %1545  ;;  %v1095_v46 = vand.u32 2147483647, %v1544_v42 }
 0x75e   :  { %1547 = vpow2.f32 %v1056_v36  ;;  %v1064_v8 = vmul.f32 0.6931472, %v1546_v48  ;;  %v1009_v36 = vsel %vm2203_vm10, %v1008_v4, %v1004_v9  ;;  %vm987_vm10 = vweird.f32 %v2180_v32 }
 0x75f   :  { %1549 = vlog2.f32 %v1089_v47  ;;  %v1093_v53 = vadd.f32 1.0, %v1092_v57  ;;  %vm1096_vm4 = vcmp.lt.f32.partialorder %v1095_v46, 0.0004427343  ;;  %v1108_v34 = vmul.f32 %v1104_v40, %v1009_v36 }
 0x760   :  { %v1070_v39 = vsel %vm2254_vm12, %v1067_v3, %v1064_v8  ;;  %v978_v46 = vor.u32 1.1754944e-38, %v977_v19  ;;  %vm1176_vm12 = vcmask 91136  }
 0x761   :  { %v1094_v41 = vmul.f32 %v1544_v42, %v1093_v53  ;;  %v1019_v42 = vsel %vm2242_vm0, %v2176_v25, %v1015_v7  ;;  %v1034_v25 = vmax.f32 %v2152_v1, 0.0  ;;  %vm2283_vm0 = vmor %vm986_vm11, %vm987_vm10 }
 0x762   :  { %v1024_v58 = vsel %vm2224_vm1, %v1023_v51, %v1019_v42  ;;  %vm2277_vm1 = vmor %vm971_vm3, %vm972_vm2  ;;  %v989_v55 = vsel %vm2283_vm0, %v2180_v32, %v985_v45  ;;  %vm1039_vm2 = vcmp.ne.f32.partialorder %v2184_v35, %v2184_v35  ;;  %vm976_vm3 = vcmp.eq.f32.partialorder %v975_v6, 8.507059e+37 }
 0x763   :  { %v1098_v14 = vadd.f32 %v1070_v39, %v1034_v25  ;;  %v974_v48 = vsel %vm2277_vm1, %v2168_v52, %v2197_v44 }
 0x764   :  { %v1548_v2 = vpop.eup %1547  ;;  %v979_v7 = vsel %vm976_vm3, %v978_v46, %v974_v48  ;;  %vm1303_vm3 = vcmask 1024  }
 0x765   :  { %v1550_v13 = vpop.eup %1549  ;;  %v1071_v18 = vadd.f32 1.0, %v1548_v2  ;;  %v1074_v33 = vmul.f32 -0.5, %v1548_v2  ;;  %v1077_v47 = vand.u32 2147483647, %v1548_v2 }
 0x766   :  { %v1091_v30 = vmul.f32 0.6931472, %v1550_v13 }
 0x767   :  { %1551 = vlog2.f32 %v1071_v18  ;;  %v1075_v15 = vadd.f32 1.0, %v1074_v33  ;;  %vm1078_vm15 = vcmp.lt.f32.partialorder %v1077_v47, 0.0004427343 }
 0x768   :  { %v1097_v17 = vsel %vm1096_vm4, %v1094_v41, %v1091_v30  ;;  %vm1038_vm4 = vcmp.ne.f32.partialorder %v2152_v1, %v2152_v1 }
 0x769   :  { %v1101_v50 = vadd.f32 %v1097_v17, %v1037_v0  ;;  %v1076_v4 = vmul.f32 %v1548_v2, %v1075_v15  ;;  %v1102_v62 = vsel %vm1038_vm4, %v2152_v1, %v1098_v14  ;;  %v993_v2 = vor.u32 1.1754944e-38, %v992_v43 }
 0x76a   :  { %v1106_v44 = vmul.f32 %v1102_v62, %v979_v7 }
 0x76b   :  { %v1105_v37 = vsel %vm1041_vm14, %v2166_v38, %v1101_v50  ;;  %v994_v52 = vsel %vm991_vm13, %v993_v2, %v989_v55  ;;  %v1570_v38 = vld [vmem:[%s2353_s3 + $0x3] ss:$0 sm:$0xff] }
 0x76c   :  { %v1109_v57 = vmul.f32 %v1105_v37, %v1024_v58 }
 0x76d   :  { %v1552_v27 = vpop.eup %1551 }
 0x76e   :  { %v1073_v21 = vmul.f32 0.6931472, %v1552_v27  ;;  %v1111_v61 = vpack.c.bf16 %v1109_v57, %v1108_v34 }
 0x770   :  { %v1079_v22 = vsel %vm1078_vm15, %v1076_v4, %v1073_v21  ;;  %1118 = vmatpush.bf16.msrb.mxu1 %v1111_v61 }
 0x771   :  { %v1099_v63 = vadd.f32 %v1079_v22, %v1035_v56 }
 0x773   :  { %v1103_v54 = vsel %vm1039_vm2, %v2184_v35, %v1099_v63  ;;  %vm1297_vm2 = vcmask 1041408  }
 0x774   :  { %v1107_v29 = vmul.f32 %v1103_v54, %v994_v52  ;;  %v1431_v52 = vld [vmem:[%s2350_s2 + $0x68] sm:$0xff] }
 0x776   :  { %v1110_v13 = vpack.c.bf16 %v1107_v29, %v1106_v44 }
 0x778   :  { %1119 = vmatpush.bf16.msrb.mxu1 %v1110_v13 }
 0x77b   :  { %1396 = vmatmul.msk.bf16.vlgmr.msrb.gmra.mxu1 %vm490_vm6, %v1635_v16  ;;  %v1447_v16 = vld [vmem:[%s2352_s1 + $0x2] ss:$0 sm:$0xff] }
 0x77c   :  { %vm1173_vm6 = vcmp.eq.s32.totalorder %v1608_v5, %v1447_v16  ;;  %1268 = vmatpush.bf16.msra.mxu1 %v1431_v52 }
 0x77d   :  { %v1397_v26 = vsel %vm1173_vm6, 1.0, %v1571_v11 }
 0x77e   :  { %v1177_v42 = vsel %vm1176_vm12, %v1397_v26, 0.0  ;;  %v1181_v55 = vpack.c.bf16 %v1397_v26, %v1397_v26 }
 0x77f   :  { %1178 = vadd.xlane.f32.xlu2 %v1177_v42 }
 0x7f2   :  { %v1179_v63 = vpop.xlane.xlu2 %1178 }
 0x7f3   :  { %v1180_v46 = vmax.f32 %v1179_v63, 1.0 }
 0x7f5   :  { %v1213_v44 = vand.u32 2147483648, %v1180_v46  ;;  %v1211_v13 = vand.u32 2147483647, %v1180_v46 }
 0x7f7   :  { %vm1212_vm1 = vcmp.eq.f32.partialorder %v1211_v13, 8.507059e+37 }
 0x7f8   :  { %v1121_v1 = vpop.f32.mrf.mxu1 }
 0x7f9   :  { %v1136_v32 = vmul.f32 %v1121_v1, %v1121_v1  ;;  %v1126_v59 = vsel %vm176_vm5, %v1121_v1, 0.0 }
 0x7fb   :  { %v1138_v35 = vsel %vm176_vm5, %v1136_v32, 0.0  ;;  %v1214_v32 = vor.u32 1.1754944e-38, %v1213_v44 }
 0x800   :  { %v1123_v24 = vpop.f32.mrf.mxu1 }
 0x801   :  { %v1127_v20 = vsel %vm509_vm7, %v1123_v24, 0.0  ;;  %v1137_v6 = vmul.f32 %v1123_v24, %v1123_v24 }
 0x802   :  { %v1128_v28 = vadd.f32 %v1127_v20, %v1126_v59  ;;  %v1428_v59 = vld [vmem:[%s2350_s2 + $0x50] sm:$0xff] }
 0x803   :  { %v1139_v18 = vsel %vm509_vm7, %v1137_v6, 0.0 }
 0x804   :  { %v1129_v49 = vrot.slane %v1128_v28, 4  ;;  %v1140_v8 = vadd.f32 %v1139_v18, %v1138_v35 }
 0x806   :  { %v1130_v30 = vadd.f32 %v1129_v49, %v1128_v28  ;;  %v1141_v41 = vrot.slane %v1140_v8, 4 }
 0x808   :  { %v1131_v33 = vrot.slane %v1130_v30, 2  ;;  %v1142_v9 = vadd.f32 %v1141_v41, %v1140_v8 }
 0x80a   :  { %v1132_v0 = vadd.f32 %v1131_v33, %v1130_v30  ;;  %v1143_v3 = vrot.slane %v1142_v9, 2 }
 0x80c   :  { %v1133_v17 = vrot.slane %v1132_v0, 1  ;;  %v1144_v40 = vadd.f32 %v1143_v3, %v1142_v9 }
 0x80e   :  { %v1134_v23 = vadd.f32 %v1133_v17, %v1132_v0  ;;  %v1145_v51 = vrot.slane %v1144_v40, 1 }
 0x810   :  { %v1135_v50 = vmul.f32 %v1134_v23, %v1898_v12  ;;  %v1146_v36 = vadd.f32 %v1145_v51, %v1144_v40 }
 0x812   :  { %v1147_v39 = vmul.f32 %v1146_v36, %v1898_v12  ;;  %v1148_v15 = vmul.f32 %v1135_v50, %v1135_v50  ;;  %v1151_v27 = vsub.f32 %v1121_v1, %v1135_v50  ;;  %v1152_v14 = vsub.f32 %v1123_v24, %v1135_v50  ;;  %v1569_v12 = vld [vmem:[%s2353_s3 + $0x2] ss:$0 sm:$0xff]  ;;  %v1429_v1 = vld [vmem:[%s2350_s2 + $0x58] sm:$0xff]  ;;  %v1448_v50 = vld [vmem:[%s2353_s3 + $0x4] ss:$0 sm:$0xff] }
 0x814   :  { %v1149_v25 = vsub.f32 %v1147_v39, %v1148_v15 }
 0x816   :  { %v1150_v58 = vmax.f32 %v1149_v25, 0.0 }
 0x818   :  { %v1153_v5 = vadd.f32 1e-05, %v1150_v58 }
 0x81a   :  { %1553 = vrsqrt.f32 %v1153_v5  ;;  %vm1160_vm14 = vweird.f32 %v1153_v5 }
 0x81b   :  { %1555 = vrcp.f32 %v1180_v46 }
 0x820   :  { %v1554_v11 = vpop.eup %1553 }
 0x821   :  { %v1155_v37 = vmul.f32 %v1554_v11, %v1153_v5  ;;  %vm1161_vm7 = vweird.f32 %v1554_v11  ;;  %v1556_v2 = vpop.eup %1555 }
 0x822   :  { %vm1162_vm10 = vmor %vm1160_vm14, %vm1161_vm7  ;;  %v1203_v54 = vmul.f32 %v1556_v2, %v1180_v46  ;;  %vm1208_vm11 = vweird.f32 %v1556_v2 }
 0x823   :  { %v1156_v47 = vmul.f32 %v1554_v11, %v1155_v37 }
 0x824   :  { %v1204_v7 = vsub.f32 1.0, %v1203_v54 }
 0x825   :  { %v1157_v34 = vmul.f32 0.5, %v1156_v47 }
 0x827   :  { %v1158_v57 = vsub.f32 1.5, %v1157_v34 }
 0x829   :  { %v1159_v45 = vmul.f32 %v1554_v11, %v1158_v57 }
 0x82b   :  { %v1163_v19 = vsel %vm1162_vm10, %v1554_v11, %v1159_v45 }
 0x82c   :  { %v1164_v43 = vmul.f32 %v1163_v19, %v1151_v27  ;;  %v1165_v21 = vmul.f32 %v1163_v19, %v1152_v14 }
 0x82e   :  { %v1166_v4 = vmul.f32 %v1569_v12, %v1164_v43  ;;  %v1167_v61 = vmul.f32 %v1569_v12, %v1165_v21  ;;  %v1449_v21 = vld [vmem:[%s2353_s3 + $0x5] ss:$0 sm:$0xff] }
 0x830   :  { %v1168_v10 = vadd.f32 %v1570_v38, %v1166_v4  ;;  %v1169_v56 = vadd.f32 %v1570_v38, %v1167_v61 }
 0x832   :  { %v1170_v53 = vadd.f32 %v1168_v10, %v2122_v60  ;;  %v1171_v22 = vadd.f32 %v1169_v56, %v2125_v31  ;;  %v1205_v60 = vmul.f32 %v1556_v2, %v1204_v7  ;;  %v1430_v31 = vld [vmem:[%s2350_s2 + $0x60] sm:$0xff] }
 0x833   :  { %1269 = vmatpush.bf16.msra.mxu1 %v1430_v31  ;;  %v1450_v10 = vld [vmem:[%s2353_s3 + $0x6] ss:$0 sm:$0xff] }
 0x834   :  { %v1182_v48 = vpack.c.bf16 %v1171_v22, %v1170_v53  ;;  %v1206_v29 = vadd.f32 %v1556_v2, %v1205_v60 }
 0x836   :  { %v1187_v62 = vsel %vm257_vm8, %v1182_v48, 0  ;;  %vm1207_vm8 = vweird.f32 %v1180_v46 }
 0x837   :  { %1196 = vmatpush.bf16.msra.mxu2 %v1187_v62  ;;  %1270 = vmatpush.bf16.msra.mxu1 %v1429_v1 }
 0x83a   :  { %1398 = vmatmul.msk.bf16.vlgmr.msra.gmra.mxu2 %vm250_vm9, %v1181_v55  ;;  %vm1209_vm9 = vmor %vm1207_vm8, %vm1208_vm11 }
 0x83b   :  { %v1210_v24 = vsel %vm1209_vm9, %v1556_v2, %v1206_v29  ;;  %1271 = vmatpush.bf16.msra.mxu1 %v1428_v59 }
 0x83c   :  { %v1215_v6 = vsel %vm1212_vm1, %v1214_v32, %v1210_v24 }
 0x8bd   :  { %v1198_v20 = vpop.f32.mrf.mxu2 }
 0x8be   :  { %v1216_v28 = vmul.f32 %v1215_v6, %v1198_v20 }
 0x8c0   :  { %v1220_v35 = vand.u32 2147483647, %v1216_v28  ;;  %v1217_v42 = vmax.f32 %v1216_v28, 0.0  ;;  %vm1218_vm0 = vcmp.ne.f32.partialorder %v1216_v28, %v1216_v28 }
 0x8c2   :  { %v1221_v18 = vsub.f32 0.0, %v1220_v35 }
 0x8c4   :  { %v1222_v49 = vmul.f32 1.442695, %v1221_v18 }
 0x8c5   :  { %v1200_v8 = vpop.f32.mrf.mxu2 }
 0x8c6   :  { %1557 = vpow2.f32 %v1222_v49 }
 0x8cc   :  { %v1558_v30 = vpop.eup %1557 }
 0x8cd   :  { %v1224_v41 = vadd.f32 1.0, %v1558_v30  ;;  %v1227_v16 = vmul.f32 -0.5, %v1558_v30  ;;  %v1230_v9 = vand.u32 2147483647, %v1558_v30 }
 0x8cf   :  { %1559 = vlog2.f32 %v1224_v41  ;;  %v1228_v33 = vadd.f32 1.0, %v1227_v16  ;;  %vm1231_vm15 = vcmp.lt.f32.partialorder %v1230_v9, 0.0004427343 }
 0x8d1   :  { %v1229_v3 = vmul.f32 %v1558_v30, %v1228_v33 }
 0x8d5   :  { %v1560_v26 = vpop.eup %1559 }
 0x8d6   :  { %v1226_v0 = vmul.f32 0.6931472, %v1560_v26 }
 0x8d8   :  { %v1232_v17 = vsel %vm1231_vm15, %v1229_v3, %v1226_v0 }
 0x8d9   :  { %v1233_v40 = vadd.f32 %v1232_v17, %v1217_v42 }
 0x8db   :  { %v1234_v23 = vsel %vm1218_vm0, %v1216_v28, %v1233_v40 }
 0x8dc   :  { %v1235_v51 = vpack.c.bf16 %v1234_v23, %v1234_v23 }
 0x8de   :  { %1415 = vmatmul.msk.bf16.vlgmr.msra.gmra.mxu1 %vm176_vm5, %v1235_v51 }
 0x95b   :  { %v1273_v36 = vpop.f32.mrf.mxu1 }
 0x95c   :  { %v1274_v39 = vadd.f32 %v1448_v50, %v1273_v36 }
 0x95e   :  { %v1280_v15 = vand.u32 2147483647, %v1274_v39  ;;  %v1277_v19 = vmax.f32 %v1274_v39, 0.0  ;;  %vm1278_vm4 = vcmp.ne.f32.partialorder %v1274_v39, %v1274_v39 }
 0x960   :  { %v1281_v25 = vsub.f32 0.0, %v1280_v15 }
 0x962   :  { %v1282_v58 = vmul.f32 1.442695, %v1281_v25 }
 0x963   :  { %v1275_v5 = vpop.f32.mrf.mxu1 }
 0x964   :  { %1561 = vpow2.f32 %v1282_v58 }
 0x96a   :  { %v1562_v11 = vpop.eup %1561 }
 0x96b   :  { %v1284_v37 = vadd.f32 1.0, %v1562_v11  ;;  %v1287_v47 = vmul.f32 -0.5, %v1562_v11  ;;  %v1290_v57 = vand.u32 2147483647, %v1562_v11 }
 0x96d   :  { %1563 = vlog2.f32 %v1284_v37  ;;  %v1288_v34 = vadd.f32 1.0, %v1287_v47  ;;  %vm1291_vm5 = vcmp.lt.f32.partialorder %v1290_v57, 0.0004427343 }
 0x96f   :  { %v1289_v14 = vmul.f32 %v1562_v11, %v1288_v34 }
 0x973   :  { %v1564_v45 = vpop.eup %1563 }
 0x974   :  { %v1286_v27 = vmul.f32 0.6931472, %v1564_v45 }
 0x976   :  { %v1292_v43 = vsel %vm1291_vm5, %v1289_v14, %v1286_v27 }
 0x977   :  { %v1293_v12 = vadd.f32 %v1292_v43, %v1277_v19 }
 0x979   :  { %v1294_v4 = vsel %vm1278_vm4, %v1274_v39, %v1293_v12 }
 0x97a   :  { %v1296_v61 = vmul.f32 %v1449_v21, %v1294_v4 }
 0x97c   :  { %v1298_v38 = vsel %vm1297_vm2, %v1296_v61, 0.0 }
 0x97d   :  { %1299 = vadd.xlane.f32.xlu1 %v1298_v38 }
 0x9f0   :  { %v1300_v56 = vpop.xlane.xlu1 %1299 }
 0x9f1   :  { %v1302_v53 = vadd.f32 %v1450_v10, %v1300_v56 }
 0x9f3   :  { %1304 = vst.msk [vmem:[%s2354_s4] sm:$0x3] %vm1303_vm3, %v1302_v53 }

</bundles_post_ra>
